<compile_context>
chip_gen: v7x
topology: tpu7x:2x2x1
jax: 0.10.0
libtpu: 0.0.40
codegen_flags: <defaults>
</compile_context>

<pallas_src>
import jax
import jax.numpy as jnp
from jax.experimental import pallas as pl
from jax.experimental.pallas import tpu as pltpu

# ---- model hyper-parameters (synthetic, small) ----
H = 32                # params.decoder_state_size
E = 16                # params.output_embedding_size
S_ENC = 8             # number of utterance encoder states
S_SCH = 8             # number of schema states
S_TOT = S_ENC + S_SCH
V = 16                # output vocabulary size
V_PAD = 128           # vocab padded to a full lane width (lane-dense everything)
NUM_LAYERS = 2        # params.decoder_num_layers
D_IN = E + 2 * H      # decoder input = [token emb, utterance ctx, schema ctx]
MAX_GEN = 4           # max_generation_length
NEG_INF = -1e30

# static sublane offsets into the packed bf16 weight slab (all multiples of 8)
_W0H_OFF = 0                    # whh0            (H,     4H)
_W1_OFF = H                     # [wih1; whh1]    (2H,    4H)
_EMBW0_OFF = 3 * H              # emb_table@wih0  (V_PAD, 4H)
_WSD_OFF = 3 * H + V_PAD        # ws_d padded     (H,     V_PAD)
_WSLAB_ROWS = 4 * H + V_PAD     # 256

# static sublane offsets into the per-call bf16 folded-state slab
_SCOREM_OFF = 0                 # [watt_u@enc.T | watt_s@sch.T] padded  (H, 128)
_CTXW0_OFF = H                  # blockdiag(enc,sch) @ wih0_ctx         (S_TOT, 4H)
_CTXWS_OFF = H + S_TOT          # blockdiag(enc,sch) @ [ws_u; ws_s]     (S_TOT, V_PAD)
_DSLAB_ROWS = H + 2 * S_TOT     # 64


def fused_decoder_kernel(wslab_ref, dslab_ref, bias_ref, state_ref, probs_ref):
    f32 = jnp.float32
    bf16 = jnp.bfloat16

    # ---- single-DMA slabs, sliced with static (sublane-tile aligned) offsets ----
    w0h    = wslab_ref[_W0H_OFF:_W0H_OFF + H, :]            # (H, 4H)    bf16
    w1     = wslab_ref[_W1_OFF:_W1_OFF + 2 * H, :]          # (2H, 4H)   bf16
    emb_w0 = wslab_ref[_EMBW0_OFF:_EMBW0_OFF + V_PAD, :]    # (V_PAD,4H) bf16
    ws_d   = wslab_ref[_WSD_OFF:_WSD_OFF + H, :]            # (H, V_PAD) bf16

    score_m = dslab_ref[_SCOREM_OFF:_SCOREM_OFF + H, :]     # (H, 128)   bf16
    ctx_w0  = dslab_ref[_CTXW0_OFF:_CTXW0_OFF + S_TOT, :]   # (S_TOT,4H) bf16
    ctx_ws  = dslab_ref[_CTXWS_OFF:_CTXWS_OFF + S_TOT, :]   # (S_TOT,V_PAD) bf16

    b0 = bias_ref[0:1, :]            # (1, 4H)    f32  (b_ih + b_hh, gate-reordered)
    b1 = bias_ref[1:2, :]            # (1, 4H)    f32
    bs = bias_ref[2:3, :]            # (1, V_PAD) f32  (pad lanes = -1e30)
    g0_start = bias_ref[3:4, :]      # (1, 4H)    f32  start_emb @ wih0_tok

    h0 = state_ref[0:1, 0:H]
    h1 = state_ref[1:2, 0:H]
    c0 = state_ref[2:3, 0:H]
    c1 = state_ref[3:4, 0:H]

    lane_idx = jax.lax.broadcasted_iota(jnp.int32, (1, V_PAD), 1)   # hoisted

    def cell(gates, c_prev):
        # gate columns pre-permuted to [i, f, o, g] -> one fused sigmoid + one tanh
        sig = jax.nn.sigmoid(gates[:, 0:3 * H])
        i, f, o = sig[:, 0:H], sig[:, H:2 * H], sig[:, 2 * H:3 * H]
        g = jnp.tanh(gates[:, 3 * H:4 * H])
        c_new = f * c_prev + i * g
        h_new = o * jnp.tanh(c_new)
        return h_new, c_new

    # layer-0 "input contribution" for the current step:
    #   step 0:   start_emb @ wih0_tok  (context vector is zeros at t=0)
    #   step t>0: onehot_{t-1} @ emb_w0 + alpha_{t-1} @ ctx_w0
    g0_in = g0_start

    for step in range(MAX_GEN):        # fully unrolled greedy decode (MAX_GEN = 4)
        # ---- layer 0 LSTM cell (torch.nn.LSTMCell semantics, b_ih+b_hh pre-summed)
        gates0 = g0_in + jnp.dot(h0.astype(bf16), w0h,
                                 preferred_element_type=f32) + b0
        h0, c0 = cell(gates0, c0)

        # ---- layer 1 LSTM cell (input = layer-0 hidden) ----
        x1 = jnp.concatenate([h0, h1], axis=1).astype(bf16)          # (1, 2H)
        gates1 = jnp.dot(x1, w1, preferred_element_type=f32) + b1
        h1, c1 = cell(gates1, c1)
        d = h1                                                        # decoder state
        d_bf = d.astype(bf16)

        # ---- both attentions: one prefolded score matmul + two lane softmaxes ----
        scores = jnp.dot(d_bf, score_m, preferred_element_type=f32)[:, 0:S_TOT]
        s_u, s_s = scores[:, 0:S_ENC], scores[:, S_ENC:S_TOT]
        e_u = jnp.exp(s_u - jnp.max(s_u, axis=1, keepdims=True))
        e_s = jnp.exp(s_s - jnp.max(s_s, axis=1, keepdims=True))
        a_u = e_u * pl.reciprocal(jnp.sum(e_u, axis=1, keepdims=True), approx=True)
        a_s = e_s * pl.reciprocal(jnp.sum(e_s, axis=1, keepdims=True), approx=True)
        alpha = jnp.concatenate([a_u, a_s], axis=1).astype(bf16)      # (1, S_TOT)

        # ---- vocab scoring: [d | ctx_u | ctx_s] @ Ws + bs, with the context block
        # folded through alpha (exact).  Pad lanes carry bias -1e30 -> prob 0. ----
        logits = (jnp.dot(d_bf, ws_d, preferred_element_type=f32)
                  + jnp.dot(alpha, ctx_ws, preferred_element_type=f32) + bs)
        row_max = jnp.max(logits, axis=1, keepdims=True)
        p = jnp.exp(logits - row_max)
        probs = p / jnp.sum(p, axis=1, keepdims=True)   # exact norm for the output dist
        probs_ref[step:step + 1, :] = probs             # per-step lane-dense store

        # ---- greedy winner from logits (reuses row_max; first max wins) ----
        win = jnp.min(jnp.where(logits == row_max, lane_idx, V_PAD),
                      axis=1, keepdims=True)                          # (1, 1) int32
        onehot = (lane_idx == win).astype(bf16)                       # (1, V_PAD)

        # ---- next step's layer-0 input contribution (embedding + contexts folded)
        if step + 1 < MAX_GEN:
            g0_in = (jnp.dot(onehot, emb_w0, preferred_element_type=f32)
                     + jnp.dot(alpha, ctx_w0, preferred_element_type=f32))


_VMEM = pl.BlockSpec(memory_space=pltpu.MemorySpace.VMEM)


@jax.jit
def _device_forward(h_init, c_init, encoder_states, schema_states,
                    wslab, bias_slab, fold_params):
    watt_u, watt_s, wih0_ctx, ws_us = fold_params

    # --- per-call folding of the encoder / schema states (plain XLA, tiny) ---
    score_m = jnp.concatenate([watt_u @ encoder_states.T,
                               watt_s @ schema_states.T], axis=1)      # (H, S_TOT)
    score_m_pad = jnp.zeros((H, V_PAD), jnp.float32).at[:, :S_TOT].set(score_m)

    bd = jnp.zeros((S_TOT, 2 * H), jnp.float32)                        # blockdiag(enc, sch)
    bd = bd.at[:S_ENC, :H].set(encoder_states).at[S_ENC:, H:].set(schema_states)
    ctx_w0 = bd @ wih0_ctx                                             # (S_TOT, 4H)
    ctx_ws = jnp.zeros((S_TOT, V_PAD), jnp.float32).at[:, :V].set(bd @ ws_us)

    dslab = jnp.concatenate([score_m_pad, ctx_w0, ctx_ws],
                            axis=0).astype(jnp.bfloat16)               # (64, 128)

    state_slab = jnp.zeros((4, V_PAD), jnp.float32)
    state_slab = state_slab.at[0, :H].set(h_init[0]).at[1, :H].set(h_init[1])
    state_slab = state_slab.at[2, :H].set(c_init[0]).at[3, :H].set(c_init[1])

    probs_pad = pl.pallas_call(
        fused_decoder_kernel,
        out_shape=jax.ShapeDtypeStruct((MAX_GEN, V_PAD), jnp.float32),
        in_specs=[_VMEM] * 4,
        out_specs=_VMEM,
    )(wslab, dslab, bias_slab, state_slab)

    probs = probs_pad[:, :V]                                   # (MAX_GEN, V)
    tok_ids = jnp.argmax(probs, axis=1).astype(jnp.int32)      # greedy sequence
    log_prob = jnp.sum(jnp.log(jnp.max(probs, axis=1)))        # device-side accumulation
    return probs, tok_ids, log_prob


def init_params(key):
    ks = jax.random.split(key, 14)
    s = 0.1
    wih0 = s * jax.random.normal(ks[0], (D_IN, 4 * H), jnp.float32)
    whh0 = s * jax.random.normal(ks[1], (H, 4 * H), jnp.float32)
    bih0 = s * jax.random.normal(ks[2], (4 * H,), jnp.float32)
    bhh0 = s * jax.random.normal(ks[3], (4 * H,), jnp.float32)
    wih1 = s * jax.random.normal(ks[4], (H, 4 * H), jnp.float32)
    whh1 = s * jax.random.normal(ks[5], (H, 4 * H), jnp.float32)
    bih1 = s * jax.random.normal(ks[6], (4 * H,), jnp.float32)
    bhh1 = s * jax.random.normal(ks[7], (4 * H,), jnp.float32)
    watt_u = s * jax.random.normal(ks[8], (H, H), jnp.float32)
    watt_s = s * jax.random.normal(ks[9], (H, H), jnp.float32)
    ws_d = s * jax.random.normal(ks[10], (H, V), jnp.float32)
    ws_u = s * jax.random.normal(ks[11], (H, V), jnp.float32)
    ws_s = s * jax.random.normal(ks[12], (H, V), jnp.float32)
    bs = s * jax.random.normal(ks[13], (4 * H,), jnp.float32)[:V]
    return (wih0, whh0, bih0, bhh0, wih1, whh1, bih1, bhh1,
            watt_u, watt_s, ws_d, ws_u, ws_s, bs)


def _perm_gates(w):
    """Reorder LSTM gate columns [i, f, g, o] (torch order) -> [i, f, o, g]."""
    i, f, g, o = (w[..., 0:H], w[..., H:2 * H], w[..., 2 * H:3 * H], w[..., 3 * H:4 * H])
    return jnp.concatenate([i, f, o, g], axis=-1)


def pack_params(raw, output_embedding_table, start_token_embedding):
    """Host-side, one-time packing/folding of the parameters into dense slabs."""
    (wih0, whh0, bih0, bhh0, wih1, whh1, bih1, bhh1,
     watt_u, watt_s, ws_d, ws_u, ws_s, bs) = raw
    f32 = jnp.float32

    wih0 = _perm_gates(wih0); whh0 = _perm_gates(whh0)
    wih1 = _perm_gates(wih1); whh1 = _perm_gates(whh1)
    b0 = _perm_gates(bih0 + bhh0)[None, :]            # torch LSTMCell: b_ih + b_hh
    b1 = _perm_gates(bih1 + bhh1)[None, :]

    wih0_tok = wih0[:E, :]                            # token-embedding block (E, 4H)
    wih0_ctx = wih0[E:, :]                            # context block (2H, 4H)

    emb_pad = jnp.zeros((V_PAD, E), f32).at[:V, :].set(output_embedding_table)
    emb_w0 = emb_pad @ wih0_tok                       # (V_PAD, 4H): emb folded into gates
    g0_start = start_token_embedding[None, :] @ wih0_tok   # (1, 4H): step-0 input term

    w1 = jnp.concatenate([wih1, whh1], axis=0)        # (2H, 4H)
    ws_d_pad = jnp.zeros((H, V_PAD), f32).at[:, :V].set(ws_d)
    bs_pad = jnp.full((1, V_PAD), NEG_INF, f32).at[0, :V].set(bs)
    ws_us = jnp.concatenate([ws_u, ws_s], axis=0)     # (2H, V): folded per-call with enc/sch

    wslab = jnp.concatenate([whh0, w1, emb_w0, ws_d_pad],
                            axis=0).astype(jnp.bfloat16)          # (256, 128) bf16
    assert wslab.shape == (_WSLAB_ROWS, V_PAD)
    bias_slab = jnp.concatenate([b0, b1, bs_pad, g0_start], axis=0)  # (4, 128) f32
    fold_params = (watt_u, watt_s, wih0_ctx, ws_us)
    return wslab, bias_slab, fold_params


def sequence_predictor_forward(final_encoder_state, encoder_states, schema_states,
                               packed, max_generation_length=MAX_GEN):
    """Greedy-decoding analogue of SequencePredictorWithSchema.forward."""
    assert max_generation_length == MAX_GEN   # generation length is compile-time fixed
    wslab, bias_slab, fold_params = packed
    h_init, c_init = final_encoder_state      # _initialize_decoder_lstm (per-layer h0/c0)
    probs, tok_ids, log_prob = _device_forward(
        h_init, c_init, encoder_states, schema_states, wslab, bias_slab, fold_params)
    predictions = probs                                        # (MAX_GEN, V), row = step dist.
    sequence = [int(t) for t in jax.device_get(tok_ids)]       # single host transfer
    probability = float(jnp.exp(log_prob))
    return predictions, sequence, probability


if __name__ == "__main__":
    key = jax.random.PRNGKey(0)
    k_par, k_h, k_c, k_enc, k_sch, k_emb, k_start = jax.random.split(key, 7)

    output_embedding_table = 0.1 * jax.random.normal(k_emb, (V, E), jnp.float32)
    start_token_embedding = 0.1 * jax.random.normal(k_start, (E,), jnp.float32)
    packed = pack_params(init_params(k_par), output_embedding_table, start_token_embedding)

    final_encoder_state = (
        0.5 * jax.random.normal(k_h, (NUM_LAYERS, H), jnp.float32),
        0.5 * jax.random.normal(k_c, (NUM_LAYERS, H), jnp.float32),
    )
    encoder_states = jax.random.normal(k_enc, (S_ENC, H), jnp.float32)
    schema_states = jax.random.normal(k_sch, (S_SCH, H), jnp.float32)

    predictions, sequence, probability = sequence_predictor_forward(
        final_encoder_state, encoder_states, schema_states, packed)

    jax.block_until_ready(predictions)
    assert predictions.shape == (MAX_GEN, V)
    assert len(sequence) == MAX_GEN
    assert bool(jnp.isfinite(predictions).all())
    # each per-step distribution should sum to ~1 (bf16 matmuls, exact normalization)
    assert bool(jnp.all(jnp.abs(jnp.sum(predictions, axis=1) - 1.0) < 1e-2))
    assert 0.0 < probability <= 1.001
    print("KERNEL_OK")
</pallas_src>

<mosaic_0001>
module attributes {stable_mosaic.version = 11 : i64} {
  func.func @fused_decoder_kernel(%arg0: memref<256x128xbf16, #tpu.memory_space<vmem>>, %arg1: memref<64x128xbf16, #tpu.memory_space<vmem>>, %arg2: memref<4x128xf32, #tpu.memory_space<vmem>>, %arg3: memref<4x128xf32, #tpu.memory_space<vmem>>, %arg4: memref<4x128xf32, #tpu.memory_space<vmem>>) attributes {dimension_semantics = [], scalar_prefetch = 0 : i64, scratch_operands = 0 : i64, tpu.core_type = #tpu.core_type<tc>} {
    %c0 = arith.constant 0 : index
    %c0_0 = arith.constant 0 : index
    %0 = vector.load %arg0[%c0, %c0_0] : memref<256x128xbf16, #tpu.memory_space<vmem>>, vector<32x128xbf16>
    %c32 = arith.constant 32 : index
    %c0_1 = arith.constant 0 : index
    %1 = vector.load %arg0[%c32, %c0_1] : memref<256x128xbf16, #tpu.memory_space<vmem>>, vector<64x128xbf16>
    %c96 = arith.constant 96 : index
    %c0_2 = arith.constant 0 : index
    %2 = vector.load %arg0[%c96, %c0_2] : memref<256x128xbf16, #tpu.memory_space<vmem>>, vector<128x128xbf16>
    %c224 = arith.constant 224 : index
    %c0_3 = arith.constant 0 : index
    %3 = vector.load %arg0[%c224, %c0_3] : memref<256x128xbf16, #tpu.memory_space<vmem>>, vector<32x128xbf16>
    %c0_4 = arith.constant 0 : index
    %c0_5 = arith.constant 0 : index
    %4 = vector.load %arg1[%c0_4, %c0_5] : memref<64x128xbf16, #tpu.memory_space<vmem>>, vector<32x128xbf16>
    %c32_6 = arith.constant 32 : index
    %c0_7 = arith.constant 0 : index
    %5 = vector.load %arg1[%c32_6, %c0_7] : memref<64x128xbf16, #tpu.memory_space<vmem>>, vector<16x128xbf16>
    %c48 = arith.constant 48 : index
    %c0_8 = arith.constant 0 : index
    %6 = vector.load %arg1[%c48, %c0_8] : memref<64x128xbf16, #tpu.memory_space<vmem>>, vector<16x128xbf16>
    %c0_9 = arith.constant 0 : index
    %c0_10 = arith.constant 0 : index
    %7 = vector.load %arg2[%c0_9, %c0_10] : memref<4x128xf32, #tpu.memory_space<vmem>>, vector<1x128xf32>
    %c1 = arith.constant 1 : index
    %c0_11 = arith.constant 0 : index
    %8 = vector.load %arg2[%c1, %c0_11] : memref<4x128xf32, #tpu.memory_space<vmem>>, vector<1x128xf32>
    %c2 = arith.constant 2 : index
    %c0_12 = arith.constant 0 : index
    %9 = vector.load %arg2[%c2, %c0_12] : memref<4x128xf32, #tpu.memory_space<vmem>>, vector<1x128xf32>
    %c3 = arith.constant 3 : index
    %c0_13 = arith.constant 0 : index
    %10 = vector.load %arg2[%c3, %c0_13] : memref<4x128xf32, #tpu.memory_space<vmem>>, vector<1x128xf32>
    %c0_14 = arith.constant 0 : index
    %c0_15 = arith.constant 0 : index
    %11 = vector.load %arg3[%c0_14, %c0_15] : memref<4x128xf32, #tpu.memory_space<vmem>>, vector<1x32xf32>
    %c1_16 = arith.constant 1 : index
    %c0_17 = arith.constant 0 : index
    %12 = vector.load %arg3[%c1_16, %c0_17] : memref<4x128xf32, #tpu.memory_space<vmem>>, vector<1x32xf32>
    %c2_18 = arith.constant 2 : index
    %c0_19 = arith.constant 0 : index
    %13 = vector.load %arg3[%c2_18, %c0_19] : memref<4x128xf32, #tpu.memory_space<vmem>>, vector<1x32xf32>
    %c3_20 = arith.constant 3 : index
    %c0_21 = arith.constant 0 : index
    %14 = vector.load %arg3[%c3_20, %c0_21] : memref<4x128xf32, #tpu.memory_space<vmem>>, vector<1x32xf32>
    %15 = tpu.iota {dimensions = array<i32: 1>} : vector<1x128xi32>
    %16 = arith.truncf %11 : vector<1x32xf32> to vector<1x32xbf16>
    %cst = arith.constant dense<0.000000e+00> : vector<1x128xf32>
    %17 = tpu.matmul %16, %0, %cst {dimension_numbers = #tpu.dot_dimension_numbers<[1], [0], [0], [1], [0, 0, 1, 1], [], []>} : vector<1x32xbf16>, vector<32x128xbf16>, vector<1x128xf32> -> vector<1x128xf32>
    %18 = arith.addf %10, %17 : vector<1x128xf32>
    %19 = arith.addf %18, %7 : vector<1x128xf32>
    %20 = vector.extract_strided_slice %19 {offsets = [0, 0], sizes = [1, 96], strides = [1, 1]} : vector<1x128xf32> to vector<1x96xf32>
    %21 = arith.negf %20 : vector<1x96xf32>
    %22 = math.exp %21 : vector<1x96xf32>
    %cst_22 = arith.constant 1.000000e+00 : f32
    %23 = vector.broadcast %cst_22 : f32 to vector<1x96xf32>
    %24 = arith.addf %23, %22 : vector<1x96xf32>
    %25 = arith.divf %23, %24 : vector<1x96xf32>
    %26 = vector.extract_strided_slice %25 {offsets = [0, 0], sizes = [1, 32], strides = [1, 1]} : vector<1x96xf32> to vector<1x32xf32>
    %27 = vector.extract_strided_slice %25 {offsets = [0, 32], sizes = [1, 32], strides = [1, 1]} : vector<1x96xf32> to vector<1x32xf32>
    %28 = vector.extract_strided_slice %25 {offsets = [0, 64], sizes = [1, 32], strides = [1, 1]} : vector<1x96xf32> to vector<1x32xf32>
    %29 = vector.extract_strided_slice %19 {offsets = [0, 96], sizes = [1, 32], strides = [1, 1]} : vector<1x128xf32> to vector<1x32xf32>
    %30 = math.tanh %29 : vector<1x32xf32>
    %31 = arith.mulf %27, %13 : vector<1x32xf32>
    %32 = arith.mulf %26, %30 : vector<1x32xf32>
    %33 = arith.addf %31, %32 : vector<1x32xf32>
    %34 = math.tanh %33 : vector<1x32xf32>
    %35 = arith.mulf %28, %34 : vector<1x32xf32>
    %36 = tpu.concatenate %35, %12 in 1 : vector<1x32xf32>, vector<1x32xf32> -> vector<1x64xf32>
    %37 = arith.truncf %36 : vector<1x64xf32> to vector<1x64xbf16>
    %cst_23 = arith.constant dense<0.000000e+00> : vector<1x128xf32>
    %38 = tpu.matmul %37, %1, %cst_23 {dimension_numbers = #tpu.dot_dimension_numbers<[1], [0], [0], [1], [0, 0, 1, 1], [], []>} : vector<1x64xbf16>, vector<64x128xbf16>, vector<1x128xf32> -> vector<1x128xf32>
    %39 = arith.addf %38, %8 : vector<1x128xf32>
    %40 = vector.extract_strided_slice %39 {offsets = [0, 0], sizes = [1, 96], strides = [1, 1]} : vector<1x128xf32> to vector<1x96xf32>
    %41 = arith.negf %40 : vector<1x96xf32>
    %42 = math.exp %41 : vector<1x96xf32>
    %cst_24 = arith.constant 1.000000e+00 : f32
    %43 = vector.broadcast %cst_24 : f32 to vector<1x96xf32>
    %44 = arith.addf %43, %42 : vector<1x96xf32>
    %45 = arith.divf %43, %44 : vector<1x96xf32>
    %46 = vector.extract_strided_slice %45 {offsets = [0, 0], sizes = [1, 32], strides = [1, 1]} : vector<1x96xf32> to vector<1x32xf32>
    %47 = vector.extract_strided_slice %45 {offsets = [0, 32], sizes = [1, 32], strides = [1, 1]} : vector<1x96xf32> to vector<1x32xf32>
    %48 = vector.extract_strided_slice %45 {offsets = [0, 64], sizes = [1, 32], strides = [1, 1]} : vector<1x96xf32> to vector<1x32xf32>
    %49 = vector.extract_strided_slice %39 {offsets = [0, 96], sizes = [1, 32], strides = [1, 1]} : vector<1x128xf32> to vector<1x32xf32>
    %50 = math.tanh %49 : vector<1x32xf32>
    %51 = arith.mulf %47, %14 : vector<1x32xf32>
    %52 = arith.mulf %46, %50 : vector<1x32xf32>
    %53 = arith.addf %51, %52 : vector<1x32xf32>
    %54 = math.tanh %53 : vector<1x32xf32>
    %55 = arith.mulf %48, %54 : vector<1x32xf32>
    %56 = arith.truncf %55 : vector<1x32xf32> to vector<1x32xbf16>
    %cst_25 = arith.constant dense<0.000000e+00> : vector<1x128xf32>
    %57 = tpu.matmul %56, %4, %cst_25 {dimension_numbers = #tpu.dot_dimension_numbers<[1], [0], [0], [1], [0, 0, 1, 1], [], []>} : vector<1x32xbf16>, vector<32x128xbf16>, vector<1x128xf32> -> vector<1x128xf32>
    %58 = vector.extract_strided_slice %57 {offsets = [0, 0], sizes = [1, 16], strides = [1, 1]} : vector<1x128xf32> to vector<1x16xf32>
    %59 = vector.extract_strided_slice %58 {offsets = [0, 0], sizes = [1, 8], strides = [1, 1]} : vector<1x16xf32> to vector<1x8xf32>
    %60 = vector.extract_strided_slice %58 {offsets = [0, 8], sizes = [1, 8], strides = [1, 1]} : vector<1x16xf32> to vector<1x8xf32>
    %cst_26 = arith.constant dense<0xFF800000> : vector<1xf32>
    %61 = vector.multi_reduction <maximumf>, %59, %cst_26 [1] : vector<1x8xf32> to vector<1xf32>
    %62 = vector.shape_cast %61 : vector<1xf32> to vector<1x1xf32>
    %63 = vector.broadcast %62 : vector<1x1xf32> to vector<1x8xf32>
    %64 = arith.subf %59, %63 : vector<1x8xf32>
    %65 = math.exp %64 : vector<1x8xf32>
    %cst_27 = arith.constant dense<0xFF800000> : vector<1xf32>
    %66 = vector.multi_reduction <maximumf>, %60, %cst_27 [1] : vector<1x8xf32> to vector<1xf32>
    %67 = vector.shape_cast %66 : vector<1xf32> to vector<1x1xf32>
    %68 = vector.broadcast %67 : vector<1x1xf32> to vector<1x8xf32>
    %69 = arith.subf %60, %68 : vector<1x8xf32>
    %70 = math.exp %69 : vector<1x8xf32>
    %cst_28 = arith.constant dense<0.000000e+00> : vector<1xf32>
    %71 = vector.multi_reduction <add>, %65, %cst_28 [1] : vector<1x8xf32> to vector<1xf32>
    %72 = vector.shape_cast %71 : vector<1xf32> to vector<1x1xf32>
    %73 = tpu.reciprocal %72 {approx = true} : vector<1x1xf32> -> vector<1x1xf32>
    %74 = vector.broadcast %73 : vector<1x1xf32> to vector<1x8xf32>
    %75 = arith.mulf %65, %74 : vector<1x8xf32>
    %cst_29 = arith.constant dense<0.000000e+00> : vector<1xf32>
    %76 = vector.multi_reduction <add>, %70, %cst_29 [1] : vector<1x8xf32> to vector<1xf32>
    %77 = vector.shape_cast %76 : vector<1xf32> to vector<1x1xf32>
    %78 = tpu.reciprocal %77 {approx = true} : vector<1x1xf32> -> vector<1x1xf32>
    %79 = vector.broadcast %78 : vector<1x1xf32> to vector<1x8xf32>
    %80 = arith.mulf %70, %79 : vector<1x8xf32>
    %81 = tpu.concatenate %75, %80 in 1 : vector<1x8xf32>, vector<1x8xf32> -> vector<1x16xf32>
    %82 = arith.truncf %81 : vector<1x16xf32> to vector<1x16xbf16>
    %cst_30 = arith.constant dense<0.000000e+00> : vector<1x128xf32>
    %83 = tpu.matmul %56, %3, %cst_30 {dimension_numbers = #tpu.dot_dimension_numbers<[1], [0], [0], [1], [0, 0, 1, 1], [], []>} : vector<1x32xbf16>, vector<32x128xbf16>, vector<1x128xf32> -> vector<1x128xf32>
    %cst_31 = arith.constant dense<0.000000e+00> : vector<1x128xf32>
    %84 = tpu.matmul %82, %6, %cst_31 {dimension_numbers = #tpu.dot_dimension_numbers<[1], [0], [0], [1], [0, 0, 1, 1], [], []>} : vector<1x16xbf16>, vector<16x128xbf16>, vector<1x128xf32> -> vector<1x128xf32>
    %85 = arith.addf %83, %84 : vector<1x128xf32>
    %86 = arith.addf %85, %9 : vector<1x128xf32>
    %cst_32 = arith.constant dense<0xFF800000> : vector<1xf32>
    %87 = vector.multi_reduction <maximumf>, %86, %cst_32 [1] : vector<1x128xf32> to vector<1xf32>
    %88 = vector.shape_cast %87 : vector<1xf32> to vector<1x1xf32>
    %89 = vector.broadcast %88 : vector<1x1xf32> to vector<1x128xf32>
    %90 = arith.subf %86, %89 : vector<1x128xf32>
    %91 = math.exp %90 : vector<1x128xf32>
    %cst_33 = arith.constant dense<0.000000e+00> : vector<1xf32>
    %92 = vector.multi_reduction <add>, %91, %cst_33 [1] : vector<1x128xf32> to vector<1xf32>
    %93 = vector.shape_cast %92 : vector<1xf32> to vector<1x1xf32>
    %94 = vector.broadcast %93 : vector<1x1xf32> to vector<1x128xf32>
    %95 = arith.divf %91, %94 : vector<1x128xf32>
    %c0_34 = arith.constant 0 : index
    %c0_35 = arith.constant 0 : index
    %96 = vector.load %arg4[%c0_34, %c0_35] : memref<4x128xf32, #tpu.memory_space<vmem>>, vector<1x128xf32>
    tpu.vector_store %arg4[%c0_34, %c0_35], %95 {strides = array<i32>} : memref<4x128xf32, #tpu.memory_space<vmem>>, vector<1x128xf32>,
    %97 = vector.broadcast %88 : vector<1x1xf32> to vector<1x128xf32>
    %98 = arith.cmpf oeq, %86, %97 : vector<1x128xf32>
    %c128_i32 = arith.constant 128 : i32
    %99 = vector.broadcast %c128_i32 : i32 to vector<1x128xi32>
    %100 = arith.select %98, %15, %99 : vector<1x128xi1>, vector<1x128xi32>
    %cst_36 = arith.constant dense<2147483647> : vector<1xi32>
    %101 = vector.multi_reduction <minsi>, %100, %cst_36 [1] : vector<1x128xi32> to vector<1xi32>
    %102 = vector.shape_cast %101 : vector<1xi32> to vector<1x1xi32>
    %103 = vector.broadcast %102 : vector<1x1xi32> to vector<1x128xi32>
    %104 = arith.cmpi eq, %15, %103 : vector<1x128xi32>
    %105 = arith.extui %104 : vector<1x128xi1> to vector<1x128xi32>
    %106 = arith.sitofp %105 : vector<1x128xi32> to vector<1x128xf32>
    %107 = arith.truncf %106 : vector<1x128xf32> to vector<1x128xbf16>
    %cst_37 = arith.constant dense<0.000000e+00> : vector<1x128xf32>
    %108 = tpu.matmul %107, %2, %cst_37 {dimension_numbers = #tpu.dot_dimension_numbers<[1], [0], [0], [1], [0, 0, 1, 1], [], []>} : vector<1x128xbf16>, vector<128x128xbf16>, vector<1x128xf32> -> vector<1x128xf32>
    %cst_38 = arith.constant dense<0.000000e+00> : vector<1x128xf32>
    %109 = tpu.matmul %82, %5, %cst_38 {dimension_numbers = #tpu.dot_dimension_numbers<[1], [0], [0], [1], [0, 0, 1, 1], [], []>} : vector<1x16xbf16>, vector<16x128xbf16>, vector<1x128xf32> -> vector<1x128xf32>
    %110 = arith.addf %108, %109 : vector<1x128xf32>
    %111 = arith.truncf %35 : vector<1x32xf32> to vector<1x32xbf16>
    %cst_39 = arith.constant dense<0.000000e+00> : vector<1x128xf32>
    %112 = tpu.matmul %111, %0, %cst_39 {dimension_numbers = #tpu.dot_dimension_numbers<[1], [0], [0], [1], [0, 0, 1, 1], [], []>} : vector<1x32xbf16>, vector<32x128xbf16>, vector<1x128xf32> -> vector<1x128xf32>
    %113 = arith.addf %110, %112 : vector<1x128xf32>
    %114 = arith.addf %113, %7 : vector<1x128xf32>
    %115 = vector.extract_strided_slice %114 {offsets = [0, 0], sizes = [1, 96], strides = [1, 1]} : vector<1x128xf32> to vector<1x96xf32>
    %116 = arith.negf %115 : vector<1x96xf32>
    %117 = math.exp %116 : vector<1x96xf32>
    %cst_40 = arith.constant 1.000000e+00 : f32
    %118 = vector.broadcast %cst_40 : f32 to vector<1x96xf32>
    %119 = arith.addf %118, %117 : vector<1x96xf32>
    %120 = arith.divf %118, %119 : vector<1x96xf32>
    %121 = vector.extract_strided_slice %120 {offsets = [0, 0], sizes = [1, 32], strides = [1, 1]} : vector<1x96xf32> to vector<1x32xf32>
    %122 = vector.extract_strided_slice %120 {offsets = [0, 32], sizes = [1, 32], strides = [1, 1]} : vector<1x96xf32> to vector<1x32xf32>
    %123 = vector.extract_strided_slice %120 {offsets = [0, 64], sizes = [1, 32], strides = [1, 1]} : vector<1x96xf32> to vector<1x32xf32>
    %124 = vector.extract_strided_slice %114 {offsets = [0, 96], sizes = [1, 32], strides = [1, 1]} : vector<1x128xf32> to vector<1x32xf32>
    %125 = math.tanh %124 : vector<1x32xf32>
    %126 = arith.mulf %122, %33 : vector<1x32xf32>
    %127 = arith.mulf %121, %125 : vector<1x32xf32>
    %128 = arith.addf %126, %127 : vector<1x32xf32>
    %129 = math.tanh %128 : vector<1x32xf32>
    %130 = arith.mulf %123, %129 : vector<1x32xf32>
    %131 = tpu.concatenate %130, %55 in 1 : vector<1x32xf32>, vector<1x32xf32> -> vector<1x64xf32>
    %132 = arith.truncf %131 : vector<1x64xf32> to vector<1x64xbf16>
    %cst_41 = arith.constant dense<0.000000e+00> : vector<1x128xf32>
    %133 = tpu.matmul %132, %1, %cst_41 {dimension_numbers = #tpu.dot_dimension_numbers<[1], [0], [0], [1], [0, 0, 1, 1], [], []>} : vector<1x64xbf16>, vector<64x128xbf16>, vector<1x128xf32> -> vector<1x128xf32>
    %134 = arith.addf %133, %8 : vector<1x128xf32>
    %135 = vector.extract_strided_slice %134 {offsets = [0, 0], sizes = [1, 96], strides = [1, 1]} : vector<1x128xf32> to vector<1x96xf32>
    %136 = arith.negf %135 : vector<1x96xf32>
    %137 = math.exp %136 : vector<1x96xf32>
    %cst_42 = arith.constant 1.000000e+00 : f32
    %138 = vector.broadcast %cst_42 : f32 to vector<1x96xf32>
    %139 = arith.addf %138, %137 : vector<1x96xf32>
    %140 = arith.divf %138, %139 : vector<1x96xf32>
    %141 = vector.extract_strided_slice %140 {offsets = [0, 0], sizes = [1, 32], strides = [1, 1]} : vector<1x96xf32> to vector<1x32xf32>
    %142 = vector.extract_strided_slice %140 {offsets = [0, 32], sizes = [1, 32], strides = [1, 1]} : vector<1x96xf32> to vector<1x32xf32>
    %143 = vector.extract_strided_slice %140 {offsets = [0, 64], sizes = [1, 32], strides = [1, 1]} : vector<1x96xf32> to vector<1x32xf32>
    %144 = vector.extract_strided_slice %134 {offsets = [0, 96], sizes = [1, 32], strides = [1, 1]} : vector<1x128xf32> to vector<1x32xf32>
    %145 = math.tanh %144 : vector<1x32xf32>
    %146 = arith.mulf %142, %53 : vector<1x32xf32>
    %147 = arith.mulf %141, %145 : vector<1x32xf32>
    %148 = arith.addf %146, %147 : vector<1x32xf32>
    %149 = math.tanh %148 : vector<1x32xf32>
    %150 = arith.mulf %143, %149 : vector<1x32xf32>
    %151 = arith.truncf %150 : vector<1x32xf32> to vector<1x32xbf16>
    %cst_43 = arith.constant dense<0.000000e+00> : vector<1x128xf32>
    %152 = tpu.matmul %151, %4, %cst_43 {dimension_numbers = #tpu.dot_dimension_numbers<[1], [0], [0], [1], [0, 0, 1, 1], [], []>} : vector<1x32xbf16>, vector<32x128xbf16>, vector<1x128xf32> -> vector<1x128xf32>
    %153 = vector.extract_strided_slice %152 {offsets = [0, 0], sizes = [1, 16], strides = [1, 1]} : vector<1x128xf32> to vector<1x16xf32>
    %154 = vector.extract_strided_slice %153 {offsets = [0, 0], sizes = [1, 8], strides = [1, 1]} : vector<1x16xf32> to vector<1x8xf32>
    %155 = vector.extract_strided_slice %153 {offsets = [0, 8], sizes = [1, 8], strides = [1, 1]} : vector<1x16xf32> to vector<1x8xf32>
    %cst_44 = arith.constant dense<0xFF800000> : vector<1xf32>
    %156 = vector.multi_reduction <maximumf>, %154, %cst_44 [1] : vector<1x8xf32> to vector<1xf32>
    %157 = vector.shape_cast %156 : vector<1xf32> to vector<1x1xf32>
    %158 = vector.broadcast %157 : vector<1x1xf32> to vector<1x8xf32>
    %159 = arith.subf %154, %158 : vector<1x8xf32>
    %160 = math.exp %159 : vector<1x8xf32>
    %cst_45 = arith.constant dense<0xFF800000> : vector<1xf32>
    %161 = vector.multi_reduction <maximumf>, %155, %cst_45 [1] : vector<1x8xf32> to vector<1xf32>
    %162 = vector.shape_cast %161 : vector<1xf32> to vector<1x1xf32>
    %163 = vector.broadcast %162 : vector<1x1xf32> to vector<1x8xf32>
    %164 = arith.subf %155, %163 : vector<1x8xf32>
    %165 = math.exp %164 : vector<1x8xf32>
    %cst_46 = arith.constant dense<0.000000e+00> : vector<1xf32>
    %166 = vector.multi_reduction <add>, %160, %cst_46 [1] : vector<1x8xf32> to vector<1xf32>
    %167 = vector.shape_cast %166 : vector<1xf32> to vector<1x1xf32>
    %168 = tpu.reciprocal %167 {approx = true} : vector<1x1xf32> -> vector<1x1xf32>
    %169 = vector.broadcast %168 : vector<1x1xf32> to vector<1x8xf32>
    %170 = arith.mulf %160, %169 : vector<1x8xf32>
    %cst_47 = arith.constant dense<0.000000e+00> : vector<1xf32>
    %171 = vector.multi_reduction <add>, %165, %cst_47 [1] : vector<1x8xf32> to vector<1xf32>
    %172 = vector.shape_cast %171 : vector<1xf32> to vector<1x1xf32>
    %173 = tpu.reciprocal %172 {approx = true} : vector<1x1xf32> -> vector<1x1xf32>
    %174 = vector.broadcast %173 : vector<1x1xf32> to vector<1x8xf32>
    %175 = arith.mulf %165, %174 : vector<1x8xf32>
    %176 = tpu.concatenate %170, %175 in 1 : vector<1x8xf32>, vector<1x8xf32> -> vector<1x16xf32>
    %177 = arith.truncf %176 : vector<1x16xf32> to vector<1x16xbf16>
    %cst_48 = arith.constant dense<0.000000e+00> : vector<1x128xf32>
    %178 = tpu.matmul %151, %3, %cst_48 {dimension_numbers = #tpu.dot_dimension_numbers<[1], [0], [0], [1], [0, 0, 1, 1], [], []>} : vector<1x32xbf16>, vector<32x128xbf16>, vector<1x128xf32> -> vector<1x128xf32>
    %cst_49 = arith.constant dense<0.000000e+00> : vector<1x128xf32>
    %179 = tpu.matmul %177, %6, %cst_49 {dimension_numbers = #tpu.dot_dimension_numbers<[1], [0], [0], [1], [0, 0, 1, 1], [], []>} : vector<1x16xbf16>, vector<16x128xbf16>, vector<1x128xf32> -> vector<1x128xf32>
    %180 = arith.addf %178, %179 : vector<1x128xf32>
    %181 = arith.addf %180, %9 : vector<1x128xf32>
    %cst_50 = arith.constant dense<0xFF800000> : vector<1xf32>
    %182 = vector.multi_reduction <maximumf>, %181, %cst_50 [1] : vector<1x128xf32> to vector<1xf32>
    %183 = vector.shape_cast %182 : vector<1xf32> to vector<1x1xf32>
    %184 = vector.broadcast %183 : vector<1x1xf32> to vector<1x128xf32>
    %185 = arith.subf %181, %184 : vector<1x128xf32>
    %186 = math.exp %185 : vector<1x128xf32>
    %cst_51 = arith.constant dense<0.000000e+00> : vector<1xf32>
    %187 = vector.multi_reduction <add>, %186, %cst_51 [1] : vector<1x128xf32> to vector<1xf32>
    %188 = vector.shape_cast %187 : vector<1xf32> to vector<1x1xf32>
    %189 = vector.broadcast %188 : vector<1x1xf32> to vector<1x128xf32>
    %190 = arith.divf %186, %189 : vector<1x128xf32>
    %c1_52 = arith.constant 1 : index
    %c0_53 = arith.constant 0 : index
    %191 = vector.load %arg4[%c1_52, %c0_53] : memref<4x128xf32, #tpu.memory_space<vmem>>, vector<1x128xf32>
    tpu.vector_store %arg4[%c1_52, %c0_53], %190 {strides = array<i32>} : memref<4x128xf32, #tpu.memory_space<vmem>>, vector<1x128xf32>,
    %192 = vector.broadcast %183 : vector<1x1xf32> to vector<1x128xf32>
    %193 = arith.cmpf oeq, %181, %192 : vector<1x128xf32>
    %c128_i32_54 = arith.constant 128 : i32
    %194 = vector.broadcast %c128_i32_54 : i32 to vector<1x128xi32>
    %195 = arith.select %193, %15, %194 : vector<1x128xi1>, vector<1x128xi32>
    %cst_55 = arith.constant dense<2147483647> : vector<1xi32>
    %196 = vector.multi_reduction <minsi>, %195, %cst_55 [1] : vector<1x128xi32> to vector<1xi32>
    %197 = vector.shape_cast %196 : vector<1xi32> to vector<1x1xi32>
    %198 = vector.broadcast %197 : vector<1x1xi32> to vector<1x128xi32>
    %199 = arith.cmpi eq, %15, %198 : vector<1x128xi32>
    %200 = arith.extui %199 : vector<1x128xi1> to vector<1x128xi32>
    %201 = arith.sitofp %200 : vector<1x128xi32> to vector<1x128xf32>
    %202 = arith.truncf %201 : vector<1x128xf32> to vector<1x128xbf16>
    %cst_56 = arith.constant dense<0.000000e+00> : vector<1x128xf32>
    %203 = tpu.matmul %202, %2, %cst_56 {dimension_numbers = #tpu.dot_dimension_numbers<[1], [0], [0], [1], [0, 0, 1, 1], [], []>} : vector<1x128xbf16>, vector<128x128xbf16>, vector<1x128xf32> -> vector<1x128xf32>
    %cst_57 = arith.constant dense<0.000000e+00> : vector<1x128xf32>
    %204 = tpu.matmul %177, %5, %cst_57 {dimension_numbers = #tpu.dot_dimension_numbers<[1], [0], [0], [1], [0, 0, 1, 1], [], []>} : vector<1x16xbf16>, vector<16x128xbf16>, vector<1x128xf32> -> vector<1x128xf32>
    %205 = arith.addf %203, %204 : vector<1x128xf32>
    %206 = arith.truncf %130 : vector<1x32xf32> to vector<1x32xbf16>
    %cst_58 = arith.constant dense<0.000000e+00> : vector<1x128xf32>
    %207 = tpu.matmul %206, %0, %cst_58 {dimension_numbers = #tpu.dot_dimension_numbers<[1], [0], [0], [1], [0, 0, 1, 1], [], []>} : vector<1x32xbf16>, vector<32x128xbf16>, vector<1x128xf32> -> vector<1x128xf32>
    %208 = arith.addf %205, %207 : vector<1x128xf32>
    %209 = arith.addf %208, %7 : vector<1x128xf32>
    %210 = vector.extract_strided_slice %209 {offsets = [0, 0], sizes = [1, 96], strides = [1, 1]} : vector<1x128xf32> to vector<1x96xf32>
    %211 = arith.negf %210 : vector<1x96xf32>
    %212 = math.exp %211 : vector<1x96xf32>
    %cst_59 = arith.constant 1.000000e+00 : f32
    %213 = vector.broadcast %cst_59 : f32 to vector<1x96xf32>
    %214 = arith.addf %213, %212 : vector<1x96xf32>
    %215 = arith.divf %213, %214 : vector<1x96xf32>
    %216 = vector.extract_strided_slice %215 {offsets = [0, 0], sizes = [1, 32], strides = [1, 1]} : vector<1x96xf32> to vector<1x32xf32>
    %217 = vector.extract_strided_slice %215 {offsets = [0, 32], sizes = [1, 32], strides = [1, 1]} : vector<1x96xf32> to vector<1x32xf32>
    %218 = vector.extract_strided_slice %215 {offsets = [0, 64], sizes = [1, 32], strides = [1, 1]} : vector<1x96xf32> to vector<1x32xf32>
    %219 = vector.extract_strided_slice %209 {offsets = [0, 96], sizes = [1, 32], strides = [1, 1]} : vector<1x128xf32> to vector<1x32xf32>
    %220 = math.tanh %219 : vector<1x32xf32>
    %221 = arith.mulf %217, %128 : vector<1x32xf32>
    %222 = arith.mulf %216, %220 : vector<1x32xf32>
    %223 = arith.addf %221, %222 : vector<1x32xf32>
    %224 = math.tanh %223 : vector<1x32xf32>
    %225 = arith.mulf %218, %224 : vector<1x32xf32>
    %226 = tpu.concatenate %225, %150 in 1 : vector<1x32xf32>, vector<1x32xf32> -> vector<1x64xf32>
    %227 = arith.truncf %226 : vector<1x64xf32> to vector<1x64xbf16>
    %cst_60 = arith.constant dense<0.000000e+00> : vector<1x128xf32>
    %228 = tpu.matmul %227, %1, %cst_60 {dimension_numbers = #tpu.dot_dimension_numbers<[1], [0], [0], [1], [0, 0, 1, 1], [], []>} : vector<1x64xbf16>, vector<64x128xbf16>, vector<1x128xf32> -> vector<1x128xf32>
    %229 = arith.addf %228, %8 : vector<1x128xf32>
    %230 = vector.extract_strided_slice %229 {offsets = [0, 0], sizes = [1, 96], strides = [1, 1]} : vector<1x128xf32> to vector<1x96xf32>
    %231 = arith.negf %230 : vector<1x96xf32>
    %232 = math.exp %231 : vector<1x96xf32>
    %cst_61 = arith.constant 1.000000e+00 : f32
    %233 = vector.broadcast %cst_61 : f32 to vector<1x96xf32>
    %234 = arith.addf %233, %232 : vector<1x96xf32>
    %235 = arith.divf %233, %234 : vector<1x96xf32>
    %236 = vector.extract_strided_slice %235 {offsets = [0, 0], sizes = [1, 32], strides = [1, 1]} : vector<1x96xf32> to vector<1x32xf32>
    %237 = vector.extract_strided_slice %235 {offsets = [0, 32], sizes = [1, 32], strides = [1, 1]} : vector<1x96xf32> to vector<1x32xf32>
    %238 = vector.extract_strided_slice %235 {offsets = [0, 64], sizes = [1, 32], strides = [1, 1]} : vector<1x96xf32> to vector<1x32xf32>
    %239 = vector.extract_strided_slice %229 {offsets = [0, 96], sizes = [1, 32], strides = [1, 1]} : vector<1x128xf32> to vector<1x32xf32>
    %240 = math.tanh %239 : vector<1x32xf32>
    %241 = arith.mulf %237, %148 : vector<1x32xf32>
    %242 = arith.mulf %236, %240 : vector<1x32xf32>
    %243 = arith.addf %241, %242 : vector<1x32xf32>
    %244 = math.tanh %243 : vector<1x32xf32>
    %245 = arith.mulf %238, %244 : vector<1x32xf32>
    %246 = arith.truncf %245 : vector<1x32xf32> to vector<1x32xbf16>
    %cst_62 = arith.constant dense<0.000000e+00> : vector<1x128xf32>
    %247 = tpu.matmul %246, %4, %cst_62 {dimension_numbers = #tpu.dot_dimension_numbers<[1], [0], [0], [1], [0, 0, 1, 1], [], []>} : vector<1x32xbf16>, vector<32x128xbf16>, vector<1x128xf32> -> vector<1x128xf32>
    %248 = vector.extract_strided_slice %247 {offsets = [0, 0], sizes = [1, 16], strides = [1, 1]} : vector<1x128xf32> to vector<1x16xf32>
    %249 = vector.extract_strided_slice %248 {offsets = [0, 0], sizes = [1, 8], strides = [1, 1]} : vector<1x16xf32> to vector<1x8xf32>
    %250 = vector.extract_strided_slice %248 {offsets = [0, 8], sizes = [1, 8], strides = [1, 1]} : vector<1x16xf32> to vector<1x8xf32>
    %cst_63 = arith.constant dense<0xFF800000> : vector<1xf32>
    %251 = vector.multi_reduction <maximumf>, %249, %cst_63 [1] : vector<1x8xf32> to vector<1xf32>
    %252 = vector.shape_cast %251 : vector<1xf32> to vector<1x1xf32>
    %253 = vector.broadcast %252 : vector<1x1xf32> to vector<1x8xf32>
    %254 = arith.subf %249, %253 : vector<1x8xf32>
    %255 = math.exp %254 : vector<1x8xf32>
    %cst_64 = arith.constant dense<0xFF800000> : vector<1xf32>
    %256 = vector.multi_reduction <maximumf>, %250, %cst_64 [1] : vector<1x8xf32> to vector<1xf32>
    %257 = vector.shape_cast %256 : vector<1xf32> to vector<1x1xf32>
    %258 = vector.broadcast %257 : vector<1x1xf32> to vector<1x8xf32>
    %259 = arith.subf %250, %258 : vector<1x8xf32>
    %260 = math.exp %259 : vector<1x8xf32>
    %cst_65 = arith.constant dense<0.000000e+00> : vector<1xf32>
    %261 = vector.multi_reduction <add>, %255, %cst_65 [1] : vector<1x8xf32> to vector<1xf32>
    %262 = vector.shape_cast %261 : vector<1xf32> to vector<1x1xf32>
    %263 = tpu.reciprocal %262 {approx = true} : vector<1x1xf32> -> vector<1x1xf32>
    %264 = vector.broadcast %263 : vector<1x1xf32> to vector<1x8xf32>
    %265 = arith.mulf %255, %264 : vector<1x8xf32>
    %cst_66 = arith.constant dense<0.000000e+00> : vector<1xf32>
    %266 = vector.multi_reduction <add>, %260, %cst_66 [1] : vector<1x8xf32> to vector<1xf32>
    %267 = vector.shape_cast %266 : vector<1xf32> to vector<1x1xf32>
    %268 = tpu.reciprocal %267 {approx = true} : vector<1x1xf32> -> vector<1x1xf32>
    %269 = vector.broadcast %268 : vector<1x1xf32> to vector<1x8xf32>
    %270 = arith.mulf %260, %269 : vector<1x8xf32>
    %271 = tpu.concatenate %265, %270 in 1 : vector<1x8xf32>, vector<1x8xf32> -> vector<1x16xf32>
    %272 = arith.truncf %271 : vector<1x16xf32> to vector<1x16xbf16>
    %cst_67 = arith.constant dense<0.000000e+00> : vector<1x128xf32>
    %273 = tpu.matmul %246, %3, %cst_67 {dimension_numbers = #tpu.dot_dimension_numbers<[1], [0], [0], [1], [0, 0, 1, 1], [], []>} : vector<1x32xbf16>, vector<32x128xbf16>, vector<1x128xf32> -> vector<1x128xf32>
    %cst_68 = arith.constant dense<0.000000e+00> : vector<1x128xf32>
    %274 = tpu.matmul %272, %6, %cst_68 {dimension_numbers = #tpu.dot_dimension_numbers<[1], [0], [0], [1], [0, 0, 1, 1], [], []>} : vector<1x16xbf16>, vector<16x128xbf16>, vector<1x128xf32> -> vector<1x128xf32>
    %275 = arith.addf %273, %274 : vector<1x128xf32>
    %276 = arith.addf %275, %9 : vector<1x128xf32>
    %cst_69 = arith.constant dense<0xFF800000> : vector<1xf32>
    %277 = vector.multi_reduction <maximumf>, %276, %cst_69 [1] : vector<1x128xf32> to vector<1xf32>
    %278 = vector.shape_cast %277 : vector<1xf32> to vector<1x1xf32>
    %279 = vector.broadcast %278 : vector<1x1xf32> to vector<1x128xf32>
    %280 = arith.subf %276, %279 : vector<1x128xf32>
    %281 = math.exp %280 : vector<1x128xf32>
    %cst_70 = arith.constant dense<0.000000e+00> : vector<1xf32>
    %282 = vector.multi_reduction <add>, %281, %cst_70 [1] : vector<1x128xf32> to vector<1xf32>
    %283 = vector.shape_cast %282 : vector<1xf32> to vector<1x1xf32>
    %284 = vector.broadcast %283 : vector<1x1xf32> to vector<1x128xf32>
    %285 = arith.divf %281, %284 : vector<1x128xf32>
    %c2_71 = arith.constant 2 : index
    %c0_72 = arith.constant 0 : index
    %286 = vector.load %arg4[%c2_71, %c0_72] : memref<4x128xf32, #tpu.memory_space<vmem>>, vector<1x128xf32>
    tpu.vector_store %arg4[%c2_71, %c0_72], %285 {strides = array<i32>} : memref<4x128xf32, #tpu.memory_space<vmem>>, vector<1x128xf32>,
    %287 = vector.broadcast %278 : vector<1x1xf32> to vector<1x128xf32>
    %288 = arith.cmpf oeq, %276, %287 : vector<1x128xf32>
    %c128_i32_73 = arith.constant 128 : i32
    %289 = vector.broadcast %c128_i32_73 : i32 to vector<1x128xi32>
    %290 = arith.select %288, %15, %289 : vector<1x128xi1>, vector<1x128xi32>
    %cst_74 = arith.constant dense<2147483647> : vector<1xi32>
    %291 = vector.multi_reduction <minsi>, %290, %cst_74 [1] : vector<1x128xi32> to vector<1xi32>
    %292 = vector.shape_cast %291 : vector<1xi32> to vector<1x1xi32>
    %293 = vector.broadcast %292 : vector<1x1xi32> to vector<1x128xi32>
    %294 = arith.cmpi eq, %15, %293 : vector<1x128xi32>
    %295 = arith.extui %294 : vector<1x128xi1> to vector<1x128xi32>
    %296 = arith.sitofp %295 : vector<1x128xi32> to vector<1x128xf32>
    %297 = arith.truncf %296 : vector<1x128xf32> to vector<1x128xbf16>
    %cst_75 = arith.constant dense<0.000000e+00> : vector<1x128xf32>
    %298 = tpu.matmul %297, %2, %cst_75 {dimension_numbers = #tpu.dot_dimension_numbers<[1], [0], [0], [1], [0, 0, 1, 1], [], []>} : vector<1x128xbf16>, vector<128x128xbf16>, vector<1x128xf32> -> vector<1x128xf32>
    %cst_76 = arith.constant dense<0.000000e+00> : vector<1x128xf32>
    %299 = tpu.matmul %272, %5, %cst_76 {dimension_numbers = #tpu.dot_dimension_numbers<[1], [0], [0], [1], [0, 0, 1, 1], [], []>} : vector<1x16xbf16>, vector<16x128xbf16>, vector<1x128xf32> -> vector<1x128xf32>
    %300 = arith.addf %298, %299 : vector<1x128xf32>
    %301 = arith.truncf %225 : vector<1x32xf32> to vector<1x32xbf16>
    %cst_77 = arith.constant dense<0.000000e+00> : vector<1x128xf32>
    %302 = tpu.matmul %301, %0, %cst_77 {dimension_numbers = #tpu.dot_dimension_numbers<[1], [0], [0], [1], [0, 0, 1, 1], [], []>} : vector<1x32xbf16>, vector<32x128xbf16>, vector<1x128xf32> -> vector<1x128xf32>
    %303 = arith.addf %300, %302 : vector<1x128xf32>
    %304 = arith.addf %303, %7 : vector<1x128xf32>
    %305 = vector.extract_strided_slice %304 {offsets = [0, 0], sizes = [1, 96], strides = [1, 1]} : vector<1x128xf32> to vector<1x96xf32>
    %306 = arith.negf %305 : vector<1x96xf32>
    %307 = math.exp %306 : vector<1x96xf32>
    %cst_78 = arith.constant 1.000000e+00 : f32
    %308 = vector.broadcast %cst_78 : f32 to vector<1x96xf32>
    %309 = arith.addf %308, %307 : vector<1x96xf32>
    %310 = arith.divf %308, %309 : vector<1x96xf32>
    %311 = vector.extract_strided_slice %310 {offsets = [0, 0], sizes = [1, 32], strides = [1, 1]} : vector<1x96xf32> to vector<1x32xf32>
    %312 = vector.extract_strided_slice %310 {offsets = [0, 32], sizes = [1, 32], strides = [1, 1]} : vector<1x96xf32> to vector<1x32xf32>
    %313 = vector.extract_strided_slice %310 {offsets = [0, 64], sizes = [1, 32], strides = [1, 1]} : vector<1x96xf32> to vector<1x32xf32>
    %314 = vector.extract_strided_slice %304 {offsets = [0, 96], sizes = [1, 32], strides = [1, 1]} : vector<1x128xf32> to vector<1x32xf32>
    %315 = math.tanh %314 : vector<1x32xf32>
    %316 = arith.mulf %312, %223 : vector<1x32xf32>
    %317 = arith.mulf %311, %315 : vector<1x32xf32>
    %318 = arith.addf %316, %317 : vector<1x32xf32>
    %319 = math.tanh %318 : vector<1x32xf32>
    %320 = arith.mulf %313, %319 : vector<1x32xf32>
    %321 = tpu.concatenate %320, %245 in 1 : vector<1x32xf32>, vector<1x32xf32> -> vector<1x64xf32>
    %322 = arith.truncf %321 : vector<1x64xf32> to vector<1x64xbf16>
    %cst_79 = arith.constant dense<0.000000e+00> : vector<1x128xf32>
    %323 = tpu.matmul %322, %1, %cst_79 {dimension_numbers = #tpu.dot_dimension_numbers<[1], [0], [0], [1], [0, 0, 1, 1], [], []>} : vector<1x64xbf16>, vector<64x128xbf16>, vector<1x128xf32> -> vector<1x128xf32>
    %324 = arith.addf %323, %8 : vector<1x128xf32>
    %325 = vector.extract_strided_slice %324 {offsets = [0, 0], sizes = [1, 96], strides = [1, 1]} : vector<1x128xf32> to vector<1x96xf32>
    %326 = arith.negf %325 : vector<1x96xf32>
    %327 = math.exp %326 : vector<1x96xf32>
    %cst_80 = arith.constant 1.000000e+00 : f32
    %328 = vector.broadcast %cst_80 : f32 to vector<1x96xf32>
    %329 = arith.addf %328, %327 : vector<1x96xf32>
    %330 = arith.divf %328, %329 : vector<1x96xf32>
    %331 = vector.extract_strided_slice %330 {offsets = [0, 0], sizes = [1, 32], strides = [1, 1]} : vector<1x96xf32> to vector<1x32xf32>
    %332 = vector.extract_strided_slice %330 {offsets = [0, 32], sizes = [1, 32], strides = [1, 1]} : vector<1x96xf32> to vector<1x32xf32>
    %333 = vector.extract_strided_slice %330 {offsets = [0, 64], sizes = [1, 32], strides = [1, 1]} : vector<1x96xf32> to vector<1x32xf32>
    %334 = vector.extract_strided_slice %324 {offsets = [0, 96], sizes = [1, 32], strides = [1, 1]} : vector<1x128xf32> to vector<1x32xf32>
    %335 = math.tanh %334 : vector<1x32xf32>
    %336 = arith.mulf %332, %243 : vector<1x32xf32>
    %337 = arith.mulf %331, %335 : vector<1x32xf32>
    %338 = arith.addf %336, %337 : vector<1x32xf32>
    %339 = math.tanh %338 : vector<1x32xf32>
    %340 = arith.mulf %333, %339 : vector<1x32xf32>
    %341 = arith.truncf %340 : vector<1x32xf32> to vector<1x32xbf16>
    %cst_81 = arith.constant dense<0.000000e+00> : vector<1x128xf32>
    %342 = tpu.matmul %341, %4, %cst_81 {dimension_numbers = #tpu.dot_dimension_numbers<[1], [0], [0], [1], [0, 0, 1, 1], [], []>} : vector<1x32xbf16>, vector<32x128xbf16>, vector<1x128xf32> -> vector<1x128xf32>
    %343 = vector.extract_strided_slice %342 {offsets = [0, 0], sizes = [1, 16], strides = [1, 1]} : vector<1x128xf32> to vector<1x16xf32>
    %344 = vector.extract_strided_slice %343 {offsets = [0, 0], sizes = [1, 8], strides = [1, 1]} : vector<1x16xf32> to vector<1x8xf32>
    %345 = vector.extract_strided_slice %343 {offsets = [0, 8], sizes = [1, 8], strides = [1, 1]} : vector<1x16xf32> to vector<1x8xf32>
    %cst_82 = arith.constant dense<0xFF800000> : vector<1xf32>
    %346 = vector.multi_reduction <maximumf>, %344, %cst_82 [1] : vector<1x8xf32> to vector<1xf32>
    %347 = vector.shape_cast %346 : vector<1xf32> to vector<1x1xf32>
    %348 = vector.broadcast %347 : vector<1x1xf32> to vector<1x8xf32>
    %349 = arith.subf %344, %348 : vector<1x8xf32>
    %350 = math.exp %349 : vector<1x8xf32>
    %cst_83 = arith.constant dense<0xFF800000> : vector<1xf32>
    %351 = vector.multi_reduction <maximumf>, %345, %cst_83 [1] : vector<1x8xf32> to vector<1xf32>
    %352 = vector.shape_cast %351 : vector<1xf32> to vector<1x1xf32>
    %353 = vector.broadcast %352 : vector<1x1xf32> to vector<1x8xf32>
    %354 = arith.subf %345, %353 : vector<1x8xf32>
    %355 = math.exp %354 : vector<1x8xf32>
    %cst_84 = arith.constant dense<0.000000e+00> : vector<1xf32>
    %356 = vector.multi_reduction <add>, %350, %cst_84 [1] : vector<1x8xf32> to vector<1xf32>
    %357 = vector.shape_cast %356 : vector<1xf32> to vector<1x1xf32>
    %358 = tpu.reciprocal %357 {approx = true} : vector<1x1xf32> -> vector<1x1xf32>
    %359 = vector.broadcast %358 : vector<1x1xf32> to vector<1x8xf32>
    %360 = arith.mulf %350, %359 : vector<1x8xf32>
    %cst_85 = arith.constant dense<0.000000e+00> : vector<1xf32>
    %361 = vector.multi_reduction <add>, %355, %cst_85 [1] : vector<1x8xf32> to vector<1xf32>
    %362 = vector.shape_cast %361 : vector<1xf32> to vector<1x1xf32>
    %363 = tpu.reciprocal %362 {approx = true} : vector<1x1xf32> -> vector<1x1xf32>
    %364 = vector.broadcast %363 : vector<1x1xf32> to vector<1x8xf32>
    %365 = arith.mulf %355, %364 : vector<1x8xf32>
    %366 = tpu.concatenate %360, %365 in 1 : vector<1x8xf32>, vector<1x8xf32> -> vector<1x16xf32>
    %367 = arith.truncf %366 : vector<1x16xf32> to vector<1x16xbf16>
    %cst_86 = arith.constant dense<0.000000e+00> : vector<1x128xf32>
    %368 = tpu.matmul %341, %3, %cst_86 {dimension_numbers = #tpu.dot_dimension_numbers<[1], [0], [0], [1], [0, 0, 1, 1], [], []>} : vector<1x32xbf16>, vector<32x128xbf16>, vector<1x128xf32> -> vector<1x128xf32>
    %cst_87 = arith.constant dense<0.000000e+00> : vector<1x128xf32>
    %369 = tpu.matmul %367, %6, %cst_87 {dimension_numbers = #tpu.dot_dimension_numbers<[1], [0], [0], [1], [0, 0, 1, 1], [], []>} : vector<1x16xbf16>, vector<16x128xbf16>, vector<1x128xf32> -> vector<1x128xf32>
    %370 = arith.addf %368, %369 : vector<1x128xf32>
    %371 = arith.addf %370, %9 : vector<1x128xf32>
    %cst_88 = arith.constant dense<0xFF800000> : vector<1xf32>
    %372 = vector.multi_reduction <maximumf>, %371, %cst_88 [1] : vector<1x128xf32> to vector<1xf32>
    %373 = vector.shape_cast %372 : vector<1xf32> to vector<1x1xf32>
    %374 = vector.broadcast %373 : vector<1x1xf32> to vector<1x128xf32>
    %375 = arith.subf %371, %374 : vector<1x128xf32>
    %376 = math.exp %375 : vector<1x128xf32>
    %cst_89 = arith.constant dense<0.000000e+00> : vector<1xf32>
    %377 = vector.multi_reduction <add>, %376, %cst_89 [1] : vector<1x128xf32> to vector<1xf32>
    %378 = vector.shape_cast %377 : vector<1xf32> to vector<1x1xf32>
    %379 = vector.broadcast %378 : vector<1x1xf32> to vector<1x128xf32>
    %380 = arith.divf %376, %379 : vector<1x128xf32>
    %c3_90 = arith.constant 3 : index
    %c0_91 = arith.constant 0 : index
    %381 = vector.load %arg4[%c3_90, %c0_91] : memref<4x128xf32, #tpu.memory_space<vmem>>, vector<1x128xf32>
    tpu.vector_store %arg4[%c3_90, %c0_91], %380 {strides = array<i32>} : memref<4x128xf32, #tpu.memory_space<vmem>>, vector<1x128xf32>,
    return
  }
}

</mosaic_0001>

<bundles_post_ra>
// kernel: _device_forward.1
= control target key start
LH: loop header
LB: loop body
LE: loop exit
PB: predicated region body
PF: predicated region fallthrough
CT: control target
= control target key end

     0   :  { %v2346_v0 = vmov 0.0   ;;  %vm2347_vm0 = vmmov 0   ;;  %vm81_vm1 = vcmask 261120   ;;  %s2348_s25 = smov 32   ;;  %s2349_s14 = smov 64   ;;  %vm189_vm2 = vcmask 523264   ;;  %s2950_s0 = inlined_call_operand.vmem [shape: bf16[256,128], index: 0, kind: input, shape index: {}]   ;;  %s2951_s3 = inlined_call_operand.vmem [shape: f32[4,128], index: 3, kind: input, shape index: {}]   ;;  %s2952_s2 = inlined_call_operand.vmem [shape: f32[4,128], index: 2, kind: input, shape index: {}]   ;;  %s2953_s1 = inlined_call_operand.vmem [shape: bf16[64,128], index: 1, kind: input, shape index: {}]   ;;  %s2954_s4 = inlined_call_operand.vmem [shape: f32[4,128], index: 4, kind: output, shape index: {}]  }
   0x1   :  { %1948 = vmatprep.subr.bf16.mxu0 %v2346_v0  ;;  %v2382_v1 = vld [vmem:[%s2950_s0] sm:$0xff]   ;;  %1952 = vmatprep.mubr.msk.bf16.mxu0 %vm2347_vm0, %v2346_v0  ;;  %v2393_v2 = vld [vmem:[%s2950_s0 + $0x8] sm:$0xff]   ;;  %v2425_v25 = vld [vmem:[%s2950_s0 + $0x10] sm:$0xff]   ;;  %vm327_vm3 = vcmask 122944   ;;  %vm320_vm4 = vcmask 57344   ;;  %s2350_s24 = smov 120  }
   0x2   :  { %1956 = vmatprep.subr.bf16.mxu1 %v2346_v0  ;;  %1964 = vmatprep.mubr.msk.bf16.mxu1 %vm2347_vm0, %v2346_v0  ;;  %v62_v3 = vld [vmem:[%s2951_s3] sm:$0x1]  ;;  %v61_v5 = vld [vmem:[%s2952_s2 + $0x3] sm:$0x1]  ;;  %v64_v14 = vld [vmem:[%s2951_s3 + $0x2] sm:$0x1] }
   0x3   :  { %1949 = vmatpush3.bf16.msra.mxu0 %v2382_v1  ;;  %v68_v4 = vpack.c.bf16 %v62_v3, %v62_v3  ;;  %v2410_v6 = vld [vmem:[%s2952_s2] sm:$0x1]  ;;  %1957 = vmatpush3.bf16.msra.mxu1 %v2425_v25  ;;  %v2431_v26 = vld [vmem:[%s2950_s0 + $0x18] sm:$0xff]   ;;  %v63_v29 = vld [vmem:[%s2951_s3 + $0x1] sm:$0x1]  ;;  %vm348_vm5 = vcmask 64512  }
   0x4   :  { %1950 = vmatprep.subr.bf16.mxu0 %v2346_v0  ;;  %1958 = vmatprep.subr.bf16.mxu1 %v2346_v0  ;;  %v2438_v27 = vld [vmem:[%s2950_s0 + $0x20] sm:$0xff]   ;;  %v2451_v30 = vld [vmem:[%s2950_s0 + $0x28] sm:$0xff]   ;;  %v2481_v55 = vld [vmem:[%s2950_s0 + $0x70] sm:$0xff]   ;;  %vm357_vm6 = vcmask 130048   ;;  %vm454_vm7 = vcmask 1040384   ;;  %s2352_s22 = smov 96  }
   0x5   :  { %v65_v31 = vld [vmem:[%s2951_s3 + $0x3] sm:$0x1]  ;;  %v2470_v38 = vld [vmem:[%s2952_s2 + $0x1] sm:$0x1]  ;;  %v2486_v56 = vld [vmem:[%s2950_s0 + $0x78] sm:$0xff]  }
   0x6   :  { %v2491_v57 = vld [vmem:[%s2953_s1] sm:$0xff]   ;;  %v2497_v58 = vld [vmem:[%s2953_s1 + $0x8] sm:$0xff]  }
   0x7   :  { %1951 = vmatpush3.bf16.msra.mxu0 %v2393_v2  ;;  %1959 = vmatpush3.bf16.msra.mxu1 %v2431_v26 }
   0x8   :  { %1968 = vmatprep.subr.bf16.mxu0 %v2346_v0  ;;  %1960 = vmatprep.subr.bf16.mxu1 %v2346_v0 }
   0xa   :  { %1953 = vmatmul.mubr.msk.bf16.vlgmr.msra.gmra.mrb[0].mxu0 %vm81_vm1, %v68_v4 }
   0xb   :  { %1972 = vmatprep.mubr.msk.bf16.mxu0 %vm2347_vm0, %v2346_v0  ;;  %1961 = vmatpush3.bf16.msra.mxu1 %v2438_v27 }
   0xc   :  { %1962 = vmatprep.subr.bf16.mxu1 %v2346_v0  ;;  %1969 = vmatpush3.bf16.msra.mxu0 %v2491_v57 }
   0xd   :  { %1970 = vmatprep.subr.bf16.mxu0 %v2346_v0 }
   0xf   :  { %1963 = vmatpush3.bf16.msra.mxu1 %v2451_v30 }
  0x10   :  { %1982 = vmatprep.subr.bf16.mxu1 %v2346_v0  ;;  %1971 = vmatpush3.bf16.msra.mxu0 %v2497_v58 }
  0x11   :  { %1976 = vmatprep.subr.bf16.mxu0 %v2346_v0 }
  0xdd   :  { %v119_v7 = vpop.f32.mrb[0].mxu0 }
  0xde   :  { %v125_v8 = vadd.f32 %v119_v7, %v61_v5  ;;  %v1954_v9 = vpop.f32.mrb[1].mxu0 }
  0xdf   :  { %v122_v10 = vpop.f32.mrb[2].mxu0 }
  0xe0   :  { %v126_v11 = vadd.f32 %v125_v8, %v2410_v6  ;;  %v1955_v12 = vpop.f32.mrb[3].mxu0 }
  0xe2   :  { %2221 = vtanh.f32 %v126_v11  ;;  %v1794_v15 = vmul.f32 -1.442695, %v126_v11 }
  0xe4   :  { %2223 = vpow2.f32 %v1794_v15 }
  0xec   :  { %v2222_v13 = vpop.eup %2221 }
  0xed   :  { %140 = vrot.lane.b32.xlu0 %v2222_v13, %s2348_s25 }
  0xee   :  { %v2224_v16 = vpop.eup %2223 }
  0xef   :  { %v130_v17 = vadd.f32 1.0, %v2224_v16 }
  0xf1   :  { %135 = vrot.lane.b32.xlu0 %v64_v14, %s2348_s25  ;;  %2225 = vrcp.f32 %v130_v17 }
  0xfb   :  { %v2226_v18 = vpop.eup %2225 }
 0x15f   :  { %v141_v19 = vpop.permute.xlu0 %140 }
 0x160   :  { %v143_v20 = vmul.f32 %v2226_v18, %v141_v19 }
 0x162   :  { %145 = vrot.lane.b32.xlu1 %v143_v20, %s2348_s25 }
 0x163   :  { %v136_v21 = vpop.permute.xlu0 %135 }
 0x164   :  { %v138_v22 = vmul.f32 %v2226_v18, %v136_v21 }
 0x1d4   :  { %v146_v23 = vpop.permute.xlu1 %145 }
 0x1d5   :  { %v2419_v24 = vadd.f32 %v146_v23, %v138_v22 }
 0x1d7   :  { %2227 = vtanh.f32 %v2419_v24 }
 0x1e1   :  { %v2228_v28 = vpop.eup %2227 }
 0x1e2   :  { %151 = vrot.lane.b32.xlu1 %v2228_v28, %s2348_s25 }
 0x1e6   :  { %160 = vrot.lane.b32.xlu1 %v63_v29, %s2348_s25  ;;  %v2526_v29 = vld [vmem:[%s2953_s1 + $0x18] sm:$0xff]  }
 0x1ea   :  { %241 = vrot.lane.b32.xlu1 %v65_v31, %s2348_s25 }
 0x254   :  { %v152_v32 = vpop.permute.xlu1 %151 }
 0x255   :  { %v2459_v33 = vmul.f32 %v2226_v18, %v152_v32 }
 0x257   :  { %156 = vrot.lane.b32.xlu0 %v2459_v33, %s2349_s14 }
 0x258   :  { %v161_v34 = vpop.permute.xlu1 %160 }
 0x25c   :  { %v242_v51 = vpop.permute.xlu1 %241 }
 0x2c9   :  { %v157_v35 = vpop.permute.xlu0 %156 }
 0x2ca   :  { %v163_v36 = vsel %vm81_vm1, %v157_v35, %v161_v34 }
 0x2cb   :  { %v164_v37 = vpack.c.bf16 %v163_v36, %v163_v36 }
 0x2cd   :  { %1965 = vmatmul.mubr.msk.bf16.vlgmr.msra.gmra.mrb[0].mxu1 %vm189_vm2, %v164_v37 }
 0x2ce   :  { %1986 = vmatprep.mubr.msk.bf16.mxu1 %vm2347_vm0, %v2346_v0  ;;  %1983 = vmatpush3.bf16.msra.mxu1 %v2481_v55 }
 0x2cf   :  { %1984 = vmatprep.subr.bf16.mxu1 %v2346_v0 }
 0x2d2   :  { %1985 = vmatpush3.bf16.msra.mxu1 %v2486_v56 }
 0x2d3   :  { %1996 = vmatprep.subr.bf16.mxu1 %v2346_v0 }
 0x3a0   :  { %v227_v39 = vpop.f32.mrb[0].mxu1 }
 0x3a1   :  { %v228_v40 = vadd.f32 %v227_v39, %v2470_v38  ;;  %v1966_v41 = vpop.f32.mrb[1].mxu1 }
 0x3a2   :  { %v230_v42 = vpop.f32.mrb[2].mxu1 }
 0x3a3   :  { %2229 = vtanh.f32 %v228_v40  ;;  %v1967_v43 = vpop.f32.mrb[3].mxu1  ;;  %v1800_v45 = vmul.f32 -1.442695, %v228_v40  ;;  %v2534_v40 = vld [vmem:[%s2953_s1 + $0x10] sm:$0xff]   ;;  %v2551_v42 = vld [vmem:[%s2952_s2 + $0x2] sm:$0x1] }
 0x3a5   :  { %2231 = vpow2.f32 %v1800_v45 }
 0x3ad   :  { %v2230_v44 = vpop.eup %2229 }
 0x3ae   :  { %246 = vrot.lane.b32.xlu0 %v2230_v44, %s2348_s25 }
 0x3af   :  { %v2232_v46 = vpop.eup %2231 }
 0x3b0   :  { %v236_v47 = vadd.f32 1.0, %v2232_v46 }
 0x3b2   :  { %2233 = vrcp.f32 %v236_v47 }
 0x3bc   :  { %v2234_v48 = vpop.eup %2233 }
 0x3bd   :  { %v244_v52 = vmul.f32 %v2234_v48, %v242_v51 }
 0x420   :  { %v247_v49 = vpop.permute.xlu0 %246 }
 0x421   :  { %v249_v50 = vmul.f32 %v2234_v48, %v247_v49 }
 0x423   :  { %251 = vrot.lane.b32.xlu0 %v249_v50, %s2348_s25 }
 0x495   :  { %v252_v53 = vpop.permute.xlu0 %251 }
 0x496   :  { %v2475_v54 = vadd.f32 %v252_v53, %v244_v52 }
 0x498   :  { %2235 = vtanh.f32 %v2475_v54 }
 0x4a2   :  { %v2236_v59 = vpop.eup %2235 }
 0x4a3   :  { %257 = vrot.lane.b32.xlu1 %v2236_v59, %s2348_s25  ;;  %v66_v59 = vlaneseq }
 0x515   :  { %v258_v60 = vpop.permute.xlu1 %257 }
 0x516   :  { %v2507_v61 = vmul.f32 %v2234_v48, %v258_v60  ;;  %v2560_v60 = vand.u32 127, %v66_v59 }
 0x518   :  { %v261_v62 = vpack.c.bf16 %v2507_v61, %v2507_v61 }
 0x51a   :  { %263 = vrot.lane.b32.xlu0 %v261_v62, %s2349_s14 }
 0x58c   :  { %v264_v63 = vpop.permute.xlu0 %263 }
 0x58d   :  { %1973 = vmatmul.mubr.msk.bf16.vlgmr.msra.gmra.mrb[4].mxu0 %vm81_vm1, %v264_v63  ;;  %1987 = vmatmul.mubr.msk.bf16.vlgmr.msra.gmra.mrb[4].mxu1 %vm81_vm1, %v264_v63 }
 0x58e   :  { %1978 = vmatprep.mubr.msk.bf16.mxu0 %vm2347_vm0, %v2346_v0  ;;  %2012 = vmatprep.mubr.msk.bf16.mxu1 %vm2347_vm0, %v2346_v0 }
 0x58f   :  { %1977 = vmatpush3.bf16.msra.mxu0 %v2526_v29 }
 0x590   :  { %1990 = vmatprep.subr.bf16.mxu0 %v2346_v0 }
 0x660   :  { %v314_v3 = vpop.f32.mrb[4].mxu0  ;;  %v447_v4 = vpop.f32.mrb[4].mxu1 }
 0x661   :  { %v1974_v5 = vpop.f32.mrb[5].mxu0  ;;  %v1988_v7 = vpop.f32.mrb[5].mxu1  ;;  %v328_v8 = vsel %vm327_vm3, %v314_v3, -inf  ;;  %v321_v9 = vsel %vm320_vm4, %v314_v3, -inf }
 0x662   :  { %v450_v10 = vpop.f32.mrb[6].mxu1  ;;  %329 = vmax.xlane.f32.xlu1 %v328_v8  ;;  %322 = vmax.xlane.f32.xlu0 %v321_v9  ;;  %v317_v11 = vpop.f32.mrb[6].mxu0  ;;  %v2571_v7 = vld [vmem:[%s2950_s0 + $0x30] sm:$0xff]   ;;  %v2577_v8 = vld [vmem:[%s2950_s0 + $0x38] sm:$0xff]   ;;  %v2584_v9 = vld [vmem:[%s2950_s0 + $0x40] sm:$0xff]  }
 0x663   :  { %v1975_v12 = vpop.f32.mrb[7].mxu0  ;;  %v1989_v13 = vpop.f32.mrb[7].mxu1  ;;  %1997 = vmatpush3.bf16.msra.mxu1 %v2571_v7  ;;  %v2591_v10 = vld [vmem:[%s2950_s0 + $0x48] sm:$0xff]   ;;  %v2598_v11 = vld [vmem:[%s2950_s0 + $0x50] sm:$0xff]  }
 0x664   :  { %1998 = vmatprep.subr.bf16.mxu1 %v2346_v0  ;;  %v2605_v12 = vld [vmem:[%s2950_s0 + $0x58] sm:$0xff]   ;;  %v2612_v13 = vld [vmem:[%s2950_s0 + $0x60] sm:$0xff]  }
 0x667   :  { %1999 = vmatpush3.bf16.msra.mxu1 %v2577_v8 }
 0x668   :  { %2000 = vmatprep.subr.bf16.mxu1 %v2346_v0 }
 0x66b   :  { %2001 = vmatpush3.bf16.msra.mxu1 %v2584_v9 }
 0x66c   :  { %2002 = vmatprep.subr.bf16.mxu1 %v2346_v0 }
 0x66f   :  { %2003 = vmatpush3.bf16.msra.mxu1 %v2591_v10 }
 0x670   :  { %2004 = vmatprep.subr.bf16.mxu1 %v2346_v0 }
 0x673   :  { %2005 = vmatpush3.bf16.msra.mxu1 %v2598_v11 }
 0x674   :  { %2006 = vmatprep.subr.bf16.mxu1 %v2346_v0 }
 0x677   :  { %2007 = vmatpush3.bf16.msra.mxu1 %v2605_v12 }
 0x678   :  { %2008 = vmatprep.subr.bf16.mxu1 %v2346_v0 }
 0x67b   :  { %2009 = vmatpush3.bf16.msra.mxu1 %v2612_v13 }
 0x67c   :  { %2010 = vmatprep.subr.bf16.mxu1 %v2346_v0 }
 0x6ef   :  { %v330_v14 = vpop.xlane.xlu1 %329  ;;  %v323_v15 = vpop.xlane.xlu0 %322 }
 0x6f0   :  { %v331_v16 = vsub.f32 %v314_v3, %v330_v14  ;;  %v324_v17 = vsub.f32 %v314_v3, %v323_v15 }
 0x6f2   :  { %v332_v18 = vmul.f32 1.442695, %v331_v16  ;;  %v325_v19 = vmul.f32 1.442695, %v324_v17 }
 0x6f4   :  { %2237 = vpow2.f32 %v332_v18  ;;  %v622_v18 = vpack.c.bf16 %v2459_v33, %v2459_v33  ;;  %v2351_v33 = vmov 1.0|1.0  }
 0x6f5   :  { %2239 = vpow2.f32 %v325_v19  ;;  %v2622_v19 = vld [vmem:[%s2950_s0 + $0x68] sm:$0xff]  }
 0x6f6   :  { %2011 = vmatpush3.bf16.msra.mxu1 %v2622_v19 }
 0x6f7   :  { %2044 = vmatprep.subr.bf16.mxu1 %v2346_v0 }
 0x6fe   :  { %v2238_v20 = vpop.eup %2237 }
 0x6ff   :  { %v2240_v21 = vpop.eup %2239  ;;  %340 = vrot.lane.b32.xlu0 %v2238_v20, %s2350_s24 }
 0x700   :  { %v334_v22 = vsel %vm320_vm4, %v2240_v21, 0.0 }
 0x701   :  { %335 = vadd.xlane.f32.xlu1 %v334_v22 }
 0x771   :  { %v341_v23 = vpop.permute.xlu0 %340 }
 0x772   :  { %v343_v28 = vsel %vm320_vm4, %v341_v23, 0.0 }
 0x773   :  { %344 = vadd.xlane.f32.xlu1 %v343_v28 }
 0x78e   :  { %v336_v31 = vpop.xlane.xlu1 %335 }
 0x78f   :  { %2241 = vrcp.f32 %v336_v31 }
 0x799   :  { %v2242_v34 = vpop.eup %2241 }
 0x79a   :  { %v338_v36 = vmul.f32 %v2242_v34, %v2240_v21 }
 0x800   :  { %v345_v32 = vpop.xlane.xlu1 %344 }
 0x801   :  { %2243 = vrcp.f32 %v345_v32 }
 0x80b   :  { %v2244_v35 = vpop.eup %2243 }
 0x80c   :  { %v347_v37 = vmul.f32 %v2244_v35, %v2238_v20 }
 0x80e   :  { %v349_v39 = vsel %vm348_vm5, %v338_v36, %v347_v37 }
 0x80f   :  { %v350_v41 = vpack.c.bf16 %v349_v39, %v349_v39 }
 0x811   :  { %1979 = vmatmul.mubr.msk.bf16.vlgmr.msra.gmra.mrb[8].mxu0 %vm357_vm6, %v350_v41 }
 0x812   :  { %1991 = vmatpush3.bf16.msra.mxu0 %v2534_v40  ;;  %1992 = vmatprep.mubr.msk.bf16.mxu0 %vm2347_vm0, %v2346_v0 }
 0x813   :  { %2016 = vmatprep.subr.bf16.mxu0 %v2346_v0 }
 0x819   :  { %1993 = vmatmul.mubr.msk.bf16.vlgmr.msra.gmra.mrb[12].mxu0 %vm357_vm6, %v350_v41 }
 0x81a   :  { %2017 = vmatpush3.bf16.msra.mxu0 %v2382_v1  ;;  %2020 = vmatprep.mubr.msk.bf16.mxu0 %vm2347_vm0, %v2346_v0 }
 0x81b   :  { %2018 = vmatprep.subr.bf16.mxu0 %v2346_v0 }
 0x81e   :  { %2019 = vmatpush3.bf16.msra.mxu0 %v2393_v2 }
 0x81f   :  { %2024 = vmatprep.subr.bf16.mxu0 %v2346_v0 }
 0x8e4   :  { %v395_v43 = vpop.f32.mrb[8].mxu0 }
 0x8e5   :  { %v448_v44 = vadd.f32 %v447_v4, %v395_v43  ;;  %v1980_v45 = vpop.f32.mrb[9].mxu0 }
 0x8e6   :  { %v398_v46 = vpop.f32.mrb[10].mxu0 }
 0x8e7   :  { %v2554_v47 = vadd.f32 %v448_v44, %v2551_v42  ;;  %v1981_v48 = vpop.f32.mrb[11].mxu0 }
 0x8e9   :  { %v455_v49 = vsel %vm454_vm7, %v2554_v47, -inf }
 0x8ea   :  { %456 = vmax.xlane.f32.xlu1 %v455_v49 }
 0x8ec   :  { %v2558_v50 = vpop.f32.mrb[12].mxu0 }
 0x8ed   :  { %v1994_v51 = vpop.f32.mrb[13].mxu0 }
 0x8ee   :  { %v531_v52 = vpop.f32.mrb[14].mxu0 }
 0x8ef   :  { %v1995_v53 = vpop.f32.mrb[15].mxu0 }
 0x977   :  { %v2562_v62 = vpop.xlane.xlu1 %456 }
 0x978   :  { %vm467_vm8 = vcmp.eq.f32.partialorder %v2554_v47, %v2562_v62 }
 0x979   :  { %v468_v63 = vsel %vm467_vm8, %v2560_v60, 128 }
 0x97a   :  { %v469_v3 = vsel %vm454_vm7, %v468_v63, 2147483647 }
 0x97b   :  { %v471_v4 = vshra.s32 %v469_v3, 16  ;;  %v470_v14 = vand.u32 65535, %v469_v3 }
 0x97d   :  { %v473_v5 = vcvt.s32.f32 %v471_v4  ;;  %v472_v16 = vcvt.s32.f32 %v470_v14 }
 0x97f   :  { %474 = vmin.xlane.f32.xlu1 %v473_v5 }
 0xa0c   :  { %v475_v15 = vpop.xlane.xlu1 %474 }
 0xa0d   :  { %vm476_vm9 = vcmp.eq.f32.partialorder %v473_v5, %v475_v15  ;;  %v481_v20 = vcvt.f32.s32 %v475_v15 }
 0xa0e   :  { %v477_v17 = vsel %vm476_vm9, %v472_v16, inf }
 0xa0f   :  { %478 = vmin.xlane.f32.xlu1 %v477_v17  ;;  %v482_v22 = vshll.u32 %v481_v20, 16 }
 0xa20   :  { %624 = vrot.lane.b32.xlu1 %v622_v18, %s2349_s14 }
 0xa9c   :  { %v479_v21 = vpop.xlane.xlu1 %478 }
 0xa9d   :  { %v480_v23 = vcvt.f32.s32 %v479_v21 }
 0xa9f   :  { %v483_v28 = vadd.s32 %v482_v22, %v480_v23 }
 0xaa0   :  { %v625_v31 = vpop.permute.xlu1 %624 }
 0xaa1   :  { %vm484_vm10 = vcmp.eq.s32.totalorder %v2560_v60, %v483_v28  ;;  %2021 = vmatmul.mubr.msk.bf16.vlgmr.msra.gmra.mrb[16].mxu0 %vm81_vm1, %v625_v31 }
 0xaa2   :  { %vm1820_vm11 = vmpackc.low %vm484_vm10, %vm484_vm10  ;;  %2025 = vmatpush3.bf16.msra.mxu0 %v2425_v25  ;;  %2032 = vmatprep.mubr.msk.bf16.mxu0 %vm2347_vm0, %v2346_v0 }
 0xaa3   :  { %2013 = vmatmul.mubr.msk.bf16.vlgmr.msra.gmra.mrb[8].mxu1 %vm1820_vm11, %v2351_v33  ;;  %2026 = vmatprep.subr.bf16.mxu0 %v2346_v0 }
 0xaa4   :  { %2045 = vmatpush3.bf16.msra.mxu1 %v2526_v29  ;;  %2046 = vmatprep.mubr.msk.bf16.mxu1 %vm2347_vm0, %v2346_v0 }
 0xaa5   :  { %2058 = vmatprep.subr.bf16.mxu1 %v2346_v0 }
 0xaa6   :  { %2027 = vmatpush3.bf16.msra.mxu0 %v2431_v26 }
 0xaa7   :  { %2028 = vmatprep.subr.bf16.mxu0 %v2346_v0 }
 0xaaa   :  { %2029 = vmatpush3.bf16.msra.mxu0 %v2438_v27 }
 0xaab   :  { %2030 = vmatprep.subr.bf16.mxu0 %v2346_v0 }
 0xaae   :  { %2031 = vmatpush3.bf16.msra.mxu0 %v2451_v30 }
 0xaaf   :  { %2036 = vmatprep.subr.bf16.mxu0 %v2346_v0 }
 0xb74   :  { %v663_v32 = vpop.f32.mrb[16].mxu0 }
 0xb75   :  { %v2022_v34 = vpop.f32.mrb[17].mxu0 }
 0xb76   :  { %v616_v35 = vpop.f32.mrb[8].mxu1  ;;  %v666_v36 = vpop.f32.mrb[18].mxu0 }
 0xb77   :  { %v617_v37 = vadd.f32 %v616_v35, %v2558_v50  ;;  %v2014_v39 = vpop.f32.mrb[9].mxu1  ;;  %v2023_v41 = vpop.f32.mrb[19].mxu0 }
 0xb78   :  { %v619_v43 = vpop.f32.mrb[10].mxu1 }
 0xb79   :  { %v669_v44 = vadd.f32 %v663_v32, %v617_v37  ;;  %v2015_v45 = vpop.f32.mrb[11].mxu1 }
 0xb7b   :  { %v670_v46 = vadd.f32 %v669_v44, %v2410_v6 }
 0xb7d   :  { %2245 = vtanh.f32 %v670_v46  ;;  %v1823_v49 = vmul.f32 -1.442695, %v670_v46 }
 0xb7f   :  { %2247 = vpow2.f32 %v1823_v49 }
 0xb87   :  { %v2246_v48 = vpop.eup %2245 }
 0xb88   :  { %680 = vrot.lane.b32.xlu0 %v2246_v48, %s2348_s25 }
 0xb89   :  { %v2248_v51 = vpop.eup %2247 }
 0xb8a   :  { %v674_v52 = vadd.f32 1.0, %v2248_v51 }
 0xb8c   :  { %2249 = vrcp.f32 %v674_v52 }
 0xb96   :  { %v2250_v53 = vpop.eup %2249 }
 0xb97   :  { %v678_v50 = vmul.f32 %v2250_v53, %v2419_v24 }
 0xbfa   :  { %v681_v59 = vpop.permute.xlu0 %680 }
 0xbfb   :  { %v683_v63 = vmul.f32 %v2250_v53, %v681_v59 }
 0xbfd   :  { %685 = vrot.lane.b32.xlu0 %v683_v63, %s2348_s25 }
 0xc6f   :  { %v686_v3 = vpop.permute.xlu0 %685 }
 0xc70   :  { %v2649_v4 = vadd.f32 %v686_v3, %v678_v50 }
 0xc72   :  { %2251 = vtanh.f32 %v2649_v4 }
 0xc7c   :  { %v2252_v5 = vpop.eup %2251 }
 0xc7d   :  { %691 = vrot.lane.b32.xlu0 %v2252_v5, %s2348_s25 }
 0xcef   :  { %v692_v14 = vpop.permute.xlu0 %691 }
 0xcf0   :  { %v2653_v15 = vmul.f32 %v2250_v53, %v692_v14 }
 0xcf2   :  { %696 = vrot.lane.b32.xlu0 %v2653_v15, %s2349_s14 }
 0xcf6   :  { %700 = vrot.lane.b32.xlu0 %v2507_v61, %s2352_s22 }
 0xd64   :  { %v697_v16 = vpop.permute.xlu0 %696 }
 0xd68   :  { %v701_v24 = vpop.permute.xlu0 %700 }
 0xd69   :  { %v703_v17 = vsel %vm81_vm1, %v697_v16, %v701_v24 }
 0xd6a   :  { %v704_v18 = vpack.c.bf16 %v703_v17, %v703_v17 }
 0xd6c   :  { %2033 = vmatmul.mubr.msk.bf16.vlgmr.msra.gmra.mrb[20].mxu0 %vm189_vm2, %v704_v18 }
 0xd6d   :  { %2037 = vmatpush3.bf16.msra.mxu0 %v2491_v57  ;;  %2040 = vmatprep.mubr.msk.bf16.mxu0 %vm2347_vm0, %v2346_v0 }
 0xd6e   :  { %2038 = vmatprep.subr.bf16.mxu0 %v2346_v0 }
 0xd71   :  { %2039 = vmatpush3.bf16.msra.mxu0 %v2497_v58 }
 0xd72   :  { %2050 = vmatprep.subr.bf16.mxu0 %v2346_v0 }
 0xe3f   :  { %v742_v20 = vpop.f32.mrb[20].mxu0 }
 0xe40   :  { %v743_v61 = vadd.f32 %v742_v20, %v2470_v38  ;;  %v2034_v21 = vpop.f32.mrb[21].mxu0 }
 0xe41   :  { %v745_v22 = vpop.f32.mrb[22].mxu0 }
 0xe42   :  { %2253 = vtanh.f32 %v743_v61  ;;  %v2035_v23 = vpop.f32.mrb[23].mxu0  ;;  %v1825_v31 = vmul.f32 -1.442695, %v743_v61 }
 0xe44   :  { %2255 = vpow2.f32 %v1825_v31 }
 0xe4c   :  { %v2254_v28 = vpop.eup %2253 }
 0xe4d   :  { %757 = vrot.lane.b32.xlu1 %v2254_v28, %s2348_s25 }
 0xe4e   :  { %v2256_v32 = vpop.eup %2255 }
 0xe4f   :  { %v751_v34 = vadd.f32 1.0, %v2256_v32 }
 0xe51   :  { %2257 = vrcp.f32 %v751_v34 }
 0xe5b   :  { %v2258_v35 = vpop.eup %2257 }
 0xe5c   :  { %v755_v39 = vmul.f32 %v2258_v35, %v2475_v54 }
 0xebf   :  { %v758_v36 = vpop.permute.xlu1 %757 }
 0xec0   :  { %v760_v37 = vmul.f32 %v2258_v35, %v758_v36 }
 0xec2   :  { %762 = vrot.lane.b32.xlu0 %v760_v37, %s2348_s25 }
 0xf34   :  { %v763_v41 = vpop.permute.xlu0 %762 }
 0xf35   :  { %v2671_v43 = vadd.f32 %v763_v41, %v755_v39 }
 0xf37   :  { %2259 = vtanh.f32 %v2671_v43 }
 0xf41   :  { %v2260_v44 = vpop.eup %2259 }
 0xf42   :  { %768 = vrot.lane.b32.xlu1 %v2260_v44, %s2348_s25 }
 0xfb4   :  { %v769_v45 = vpop.permute.xlu1 %768 }
 0xfb5   :  { %v2675_v46 = vmul.f32 %v2258_v35, %v769_v45 }
 0xfb7   :  { %v772_v48 = vpack.c.bf16 %v2675_v46, %v2675_v46 }
 0xfb9   :  { %774 = vrot.lane.b32.xlu0 %v772_v48, %s2349_s14 }
0x102b   :  { %v775_v49 = vpop.permute.xlu0 %774 }
0x102c   :  { %2041 = vmatmul.mubr.msk.bf16.vlgmr.msra.gmra.mrb[24].mxu0 %vm81_vm1, %v775_v49 }
0x102d   :  { %2051 = vmatpush3.bf16.msra.mxu0 %v2481_v55  ;;  %2054 = vmatprep.mubr.msk.bf16.mxu0 %vm2347_vm0, %v2346_v0 }
0x102e   :  { %2052 = vmatprep.subr.bf16.mxu0 %v2346_v0 }
0x1031   :  { %2053 = vmatpush3.bf16.msra.mxu0 %v2486_v56 }
0x1032   :  { %2064 = vmatprep.subr.bf16.mxu0 %v2346_v0 }
0x1034   :  { %2055 = vmatmul.mubr.msk.bf16.vlgmr.msra.gmra.mrb[28].mxu0 %vm81_vm1, %v775_v49 }
0x1035   :  { %2065 = vmatpush3.bf16.msra.mxu0 %v2571_v7  ;;  %2080 = vmatprep.mubr.msk.bf16.mxu0 %vm2347_vm0, %v2346_v0 }
0x1036   :  { %2066 = vmatprep.subr.bf16.mxu0 %v2346_v0 }
0x1039   :  { %2067 = vmatpush3.bf16.msra.mxu0 %v2577_v8 }
0x103a   :  { %2068 = vmatprep.subr.bf16.mxu0 %v2346_v0 }
0x103d   :  { %2069 = vmatpush3.bf16.msra.mxu0 %v2584_v9 }
0x103e   :  { %2070 = vmatprep.subr.bf16.mxu0 %v2346_v0 }
0x1041   :  { %2071 = vmatpush3.bf16.msra.mxu0 %v2591_v10 }
0x1042   :  { %2072 = vmatprep.subr.bf16.mxu0 %v2346_v0 }
0x1045   :  { %2073 = vmatpush3.bf16.msra.mxu0 %v2598_v11 }
0x1046   :  { %2074 = vmatprep.subr.bf16.mxu0 %v2346_v0 }
0x1049   :  { %2075 = vmatpush3.bf16.msra.mxu0 %v2605_v12 }
0x104a   :  { %2076 = vmatprep.subr.bf16.mxu0 %v2346_v0 }
0x104d   :  { %2077 = vmatpush3.bf16.msra.mxu0 %v2612_v13 }
0x104e   :  { %2078 = vmatprep.subr.bf16.mxu0 %v2346_v0 }
0x1051   :  { %2079 = vmatpush3.bf16.msra.mxu0 %v2622_v19 }
0x1052   :  { %2112 = vmatprep.subr.bf16.mxu0 %v2346_v0 }
0x10ff   :  { %v813_v54 = vpop.f32.mrb[24].mxu0 }
0x1100   :  { %v2042_v51 = vpop.f32.mrb[25].mxu0  ;;  %v825_v52 = vsel %vm327_vm3, %v813_v54, -inf  ;;  %v819_v53 = vsel %vm320_vm4, %v813_v54, -inf }
0x1101   :  { %826 = vmax.xlane.f32.xlu1 %v825_v52  ;;  %820 = vmax.xlane.f32.xlu0 %v819_v53  ;;  %v816_v59 = vpop.f32.mrb[26].mxu0 }
0x1102   :  { %v2043_v63 = vpop.f32.mrb[27].mxu0 }
0x1107   :  { %v924_v50 = vpop.f32.mrb[28].mxu0 }
0x1108   :  { %v2056_v3 = vpop.f32.mrb[29].mxu0 }
0x1109   :  { %v927_v5 = vpop.f32.mrb[30].mxu0 }
0x110a   :  { %v2057_v14 = vpop.f32.mrb[31].mxu0 }
0x118e   :  { %v827_v16 = vpop.xlane.xlu1 %826  ;;  %v821_v24 = vpop.xlane.xlu0 %820 }
0x118f   :  { %v828_v17 = vsub.f32 %v813_v54, %v827_v16  ;;  %v822_v18 = vsub.f32 %v813_v54, %v821_v24 }
0x1191   :  { %v829_v20 = vmul.f32 1.442695, %v828_v17  ;;  %v823_v61 = vmul.f32 1.442695, %v822_v18 }
0x1193   :  { %2261 = vpow2.f32 %v829_v20 }
0x1194   :  { %2263 = vpow2.f32 %v823_v61  ;;  %v1044_v61 = vpack.c.bf16 %v2653_v15, %v2653_v15 }
0x119d   :  { %v2262_v21 = vpop.eup %2261 }
0x119e   :  { %v2264_v22 = vpop.eup %2263  ;;  %837 = vrot.lane.b32.xlu0 %v2262_v21, %s2350_s24 }
0x119f   :  { %v831_v23 = vsel %vm320_vm4, %v2264_v22, 0.0 }
0x11a0   :  { %832 = vadd.xlane.f32.xlu1 %v831_v23 }
0x1210   :  { %v838_v28 = vpop.permute.xlu0 %837 }
0x1211   :  { %v840_v31 = vsel %vm320_vm4, %v838_v28, 0.0 }
0x1212   :  { %841 = vadd.xlane.f32.xlu1 %v840_v31 }
0x122d   :  { %v833_v32 = vpop.xlane.xlu1 %832 }
0x122e   :  { %2265 = vrcp.f32 %v833_v32 }
0x1238   :  { %v2266_v35 = vpop.eup %2265 }
0x1239   :  { %v835_v37 = vmul.f32 %v2266_v35, %v2264_v22 }
0x129f   :  { %v842_v34 = vpop.xlane.xlu1 %841 }
0x12a0   :  { %2267 = vrcp.f32 %v842_v34 }
0x12aa   :  { %v2268_v36 = vpop.eup %2267 }
0x12ab   :  { %v844_v39 = vmul.f32 %v2268_v36, %v2262_v21 }
0x12ad   :  { %v845_v41 = vsel %vm348_vm5, %v835_v37, %v844_v39 }
0x12ae   :  { %v846_v44 = vpack.c.bf16 %v845_v41, %v845_v41 }
0x12b0   :  { %2047 = vmatmul.mubr.msk.bf16.vlgmr.msra.gmra.mrb[12].mxu1 %vm357_vm6, %v846_v44 }
0x12b1   :  { %2059 = vmatpush3.bf16.msra.mxu1 %v2534_v40  ;;  %2060 = vmatprep.mubr.msk.bf16.mxu1 %vm2347_vm0, %v2346_v0 }
0x12b2   :  { %2084 = vmatprep.subr.bf16.mxu1 %v2346_v0 }
0x12b8   :  { %2061 = vmatmul.mubr.msk.bf16.vlgmr.msra.gmra.mrb[16].mxu1 %vm357_vm6, %v846_v44 }
0x12b9   :  { %2085 = vmatpush3.bf16.msra.mxu1 %v2382_v1  ;;  %2088 = vmatprep.mubr.msk.bf16.mxu1 %vm2347_vm0, %v2346_v0 }
0x12ba   :  { %2086 = vmatprep.subr.bf16.mxu1 %v2346_v0 }
0x12bd   :  { %2087 = vmatpush3.bf16.msra.mxu1 %v2393_v2 }
0x12be   :  { %2092 = vmatprep.subr.bf16.mxu1 %v2346_v0 }
0x1383   :  { %v884_v45 = vpop.f32.mrb[12].mxu1 }
0x1384   :  { %v925_v48 = vadd.f32 %v924_v50, %v884_v45  ;;  %v2048_v49 = vpop.f32.mrb[13].mxu1 }
0x1385   :  { %v887_v54 = vpop.f32.mrb[14].mxu1 }
0x1386   :  { %v2725_v51 = vadd.f32 %v925_v48, %v2551_v42  ;;  %v2049_v52 = vpop.f32.mrb[15].mxu1 }
0x1388   :  { %v931_v1 = vsel %vm454_vm7, %v2725_v51, -inf }
0x1389   :  { %932 = vmax.xlane.f32.xlu1 %v931_v1 }
0x138b   :  { %v998_v53 = vpop.f32.mrb[16].mxu1 }
0x138c   :  { %v2062_v59 = vpop.f32.mrb[17].mxu1 }
0x138d   :  { %v1001_v63 = vpop.f32.mrb[18].mxu1 }
0x138e   :  { %v2063_v3 = vpop.f32.mrb[19].mxu1 }
0x1416   :  { %v2729_v5 = vpop.xlane.xlu1 %932 }
0x1417   :  { %vm943_vm12 = vcmp.eq.f32.partialorder %v2725_v51, %v2729_v5 }
0x1418   :  { %v944_v2 = vsel %vm943_vm12, %v2560_v60, 128 }
0x1419   :  { %v945_v50 = vsel %vm454_vm7, %v944_v2, 2147483647 }
0x141a   :  { %v947_v14 = vshra.s32 %v945_v50, 16  ;;  %v946_v24 = vand.u32 65535, %v945_v50 }
0x141c   :  { %v949_v16 = vcvt.s32.f32 %v947_v14  ;;  %v948_v18 = vcvt.s32.f32 %v946_v24 }
0x141e   :  { %950 = vmin.xlane.f32.xlu1 %v949_v16 }
0x14ab   :  { %v951_v17 = vpop.xlane.xlu1 %950 }
0x14ac   :  { %vm952_vm13 = vcmp.eq.f32.partialorder %v949_v16, %v951_v17  ;;  %v957_v21 = vcvt.f32.s32 %v951_v17 }
0x14ad   :  { %v953_v20 = vsel %vm952_vm13, %v948_v18, inf }
0x14ae   :  { %954 = vmin.xlane.f32.xlu1 %v953_v20  ;;  %v958_v23 = vshll.u32 %v957_v21, 16 }
0x14bf   :  { %1046 = vrot.lane.b32.xlu1 %v1044_v61, %s2349_s14 }
0x153b   :  { %v955_v22 = vpop.xlane.xlu1 %954 }
0x153c   :  { %v956_v28 = vcvt.f32.s32 %v955_v22 }
0x153e   :  { %v959_v31 = vadd.s32 %v958_v23, %v956_v28 }
0x153f   :  { %v1047_v32 = vpop.permute.xlu1 %1046 }
0x1540   :  { %vm960_vm14 = vcmp.eq.s32.totalorder %v2560_v60, %v959_v31  ;;  %2089 = vmatmul.mubr.msk.bf16.vlgmr.msra.gmra.mrb[20].mxu1 %vm81_vm1, %v1047_v32 }
0x1541   :  { %vm1831_vm15 = vmpackc.low %vm960_vm14, %vm960_vm14  ;;  %2093 = vmatpush3.bf16.msra.mxu1 %v2425_v25  ;;  %2100 = vmatprep.mubr.msk.bf16.mxu1 %vm2347_vm0, %v2346_v0 }
0x1542   :  { %2081 = vmatmul.mubr.msk.bf16.vlgmr.msra.gmra.mrb[32].mxu0 %vm1831_vm15, %v2351_v33  ;;  %2094 = vmatprep.subr.bf16.mxu1 %v2346_v0 }
0x1543   :  { %2113 = vmatpush3.bf16.msra.mxu0 %v2526_v29  ;;  %2114 = vmatprep.mubr.msk.bf16.mxu0 %vm2347_vm0, %v2346_v0 }
0x1544   :  { %2126 = vmatprep.subr.bf16.mxu0 %v2346_v0 }
0x1545   :  { %2095 = vmatpush3.bf16.msra.mxu1 %v2431_v26 }
0x1546   :  { %2096 = vmatprep.subr.bf16.mxu1 %v2346_v0 }
0x1549   :  { %2097 = vmatpush3.bf16.msra.mxu1 %v2438_v27 }
0x154a   :  { %2098 = vmatprep.subr.bf16.mxu1 %v2346_v0 }
0x154d   :  { %2099 = vmatpush3.bf16.msra.mxu1 %v2451_v30 }
0x154e   :  { %2104 = vmatprep.subr.bf16.mxu1 %v2346_v0 }
0x1613   :  { %v1085_v25 = vpop.f32.mrb[20].mxu1 }
0x1614   :  { %v2090_v15 = vpop.f32.mrb[21].mxu1 }
0x1615   :  { %v1038_v34 = vpop.f32.mrb[32].mxu0  ;;  %v1088_v35 = vpop.f32.mrb[22].mxu1 }
0x1616   :  { %v1039_v36 = vadd.f32 %v1038_v34, %v998_v53  ;;  %v2082_v37 = vpop.f32.mrb[33].mxu0  ;;  %v2091_v39 = vpop.f32.mrb[23].mxu1 }
0x1617   :  { %v1041_v41 = vpop.f32.mrb[34].mxu0 }
0x1618   :  { %v1091_v44 = vadd.f32 %v1085_v25, %v1039_v36  ;;  %v2083_v26 = vpop.f32.mrb[35].mxu0 }
0x161a   :  { %v1092_v45 = vadd.f32 %v1091_v44, %v2410_v6 }
0x161c   :  { %2269 = vtanh.f32 %v1092_v45  ;;  %v1834_v48 = vmul.f32 -1.442695, %v1092_v45 }
0x161e   :  { %2271 = vpow2.f32 %v1834_v48 }
0x1626   :  { %v2270_v27 = vpop.eup %2269 }
0x1627   :  { %1102 = vrot.lane.b32.xlu0 %v2270_v27, %s2348_s25 }
0x1628   :  { %v2272_v30 = vpop.eup %2271 }
0x1629   :  { %v1096_v49 = vadd.f32 1.0, %v2272_v30 }
0x162b   :  { %2273 = vrcp.f32 %v1096_v49 }
0x1635   :  { %v2274_v54 = vpop.eup %2273 }
0x1636   :  { %v1100_v53 = vmul.f32 %v2274_v54, %v2649_v4 }
0x1699   :  { %v1103_v52 = vpop.permute.xlu0 %1102 }
0x169a   :  { %v1105_v1 = vmul.f32 %v2274_v54, %v1103_v52 }
0x169c   :  { %1107 = vrot.lane.b32.xlu0 %v1105_v1, %s2348_s25 }
0x170e   :  { %v1108_v59 = vpop.permute.xlu0 %1107 }
0x170f   :  { %v2759_v63 = vadd.f32 %v1108_v59, %v1100_v53 }
0x1711   :  { %2275 = vtanh.f32 %v2759_v63 }
0x171b   :  { %v2276_v6 = vpop.eup %2275 }
0x171c   :  { %1113 = vrot.lane.b32.xlu0 %v2276_v6, %s2348_s25 }
0x178e   :  { %v1114_v3 = vpop.permute.xlu0 %1113 }
0x178f   :  { %v2763_v2 = vmul.f32 %v2274_v54, %v1114_v3 }
0x1791   :  { %1118 = vrot.lane.b32.xlu0 %v2763_v2, %s2349_s14 }
0x1795   :  { %1122 = vrot.lane.b32.xlu0 %v2675_v46, %s2352_s22 }
0x1803   :  { %v1119_v50 = vpop.permute.xlu0 %1118 }
0x1807   :  { %v1123_v14 = vpop.permute.xlu0 %1122 }
0x1808   :  { %v1125_v4 = vsel %vm81_vm1, %v1119_v50, %v1123_v14  ;;  %v2333_v14 = vld [vmem:[%s2950_s0] sm:$0xff]  }
0x1809   :  { %v1126_v16 = vpack.c.bf16 %v1125_v4, %v1125_v4 }
0x180b   :  { %2101 = vmatmul.mubr.msk.bf16.vlgmr.msra.gmra.mrb[24].mxu1 %vm189_vm2, %v1126_v16 }
0x180c   :  { %2105 = vmatpush3.bf16.msra.mxu1 %v2491_v57  ;;  %2108 = vmatprep.mubr.msk.bf16.mxu1 %vm2347_vm0, %v2346_v0 }
0x180d   :  { %2106 = vmatprep.subr.bf16.mxu1 %v2346_v0 }
0x1810   :  { %2107 = vmatpush3.bf16.msra.mxu1 %v2497_v58 }
0x1811   :  { %2118 = vmatprep.subr.bf16.mxu1 %v2346_v0 }
0x18de   :  { %v1164_v24 = vpop.f32.mrb[24].mxu1 }
0x18df   :  { %v1165_v46 = vadd.f32 %v1164_v24, %v2470_v38  ;;  %v2102_v17 = vpop.f32.mrb[25].mxu1 }
0x18e0   :  { %v1167_v18 = vpop.f32.mrb[26].mxu1 }
0x18e1   :  { %2277 = vtanh.f32 %v1165_v46  ;;  %v2103_v20 = vpop.f32.mrb[27].mxu1  ;;  %v1836_v57 = vmul.f32 -1.442695, %v1165_v46 }
0x18e3   :  { %2279 = vpow2.f32 %v1836_v57 }
0x18eb   :  { %v2278_v61 = vpop.eup %2277 }
0x18ec   :  { %1179 = vrot.lane.b32.xlu1 %v2278_v61, %s2348_s25 }
0x18ed   :  { %v2280_v21 = vpop.eup %2279 }
0x18ee   :  { %v1173_v22 = vadd.f32 1.0, %v2280_v21 }
0x18f0   :  { %2281 = vrcp.f32 %v1173_v22 }
0x18fa   :  { %v2282_v23 = vpop.eup %2281 }
0x18fb   :  { %v1177_v31 = vmul.f32 %v2282_v23, %v2671_v43 }
0x195e   :  { %v1180_v28 = vpop.permute.xlu1 %1179 }
0x195f   :  { %v1182_v58 = vmul.f32 %v2282_v23, %v1180_v28 }
0x1961   :  { %1184 = vrot.lane.b32.xlu0 %v1182_v58, %s2348_s25 }
0x19d3   :  { %v1185_v38 = vpop.permute.xlu0 %1184 }
0x19d4   :  { %v2781_v32 = vadd.f32 %v1185_v38, %v1177_v31 }
0x19d6   :  { %2283 = vtanh.f32 %v2781_v32 }
0x19e0   :  { %v2284_v25 = vpop.eup %2283 }
0x19e1   :  { %1190 = vrot.lane.b32.xlu1 %v2284_v25, %s2348_s25 }
0x1a53   :  { %v1191_v15 = vpop.permute.xlu1 %1190 }
0x1a54   :  { %v2785_v34 = vmul.f32 %v2282_v23, %v1191_v15 }
0x1a56   :  { %v1194_v35 = vpack.c.bf16 %v2785_v34, %v2785_v34 }
0x1a58   :  { %1196 = vrot.lane.b32.xlu0 %v1194_v35, %s2349_s14 }
0x1aca   :  { %v1197_v36 = vpop.permute.xlu0 %1196 }
0x1acb   :  { %2109 = vmatmul.mubr.msk.bf16.vlgmr.msra.gmra.mrb[28].mxu1 %vm81_vm1, %v1197_v36 }
0x1acc   :  { %2119 = vmatpush3.bf16.msra.mxu1 %v2481_v55  ;;  %2122 = vmatprep.mubr.msk.bf16.mxu1 %vm2347_vm0, %v2346_v0 }
0x1acd   :  { %2120 = vmatprep.subr.bf16.mxu1 %v2346_v0 }
0x1ad0   :  { %2121 = vmatpush3.bf16.msra.mxu1 %v2486_v56 }
0x1ad1   :  { %2132 = vmatprep.subr.bf16.mxu1 %v2346_v0 }
0x1ad3   :  { %2123 = vmatmul.mubr.msk.bf16.vlgmr.msra.gmra.mrb[32].mxu1 %vm81_vm1, %v1197_v36  ;;  %v1466_v36 = vpack.c.bf16 %v2763_v2, %v2763_v2  ;;  %v2337_v2 = vld [vmem:[%s2950_s0 + $0x20] sm:$0xff]  }
0x1ad4   :  { %2133 = vmatpush3.bf16.msra.mxu1 %v2571_v7  ;;  %2148 = vmatprep.mubr.msk.bf16.mxu1 %vm2347_vm0, %v2346_v0 }
0x1ad5   :  { %2134 = vmatprep.subr.bf16.mxu1 %v2346_v0 }
0x1ad8   :  { %2135 = vmatpush3.bf16.msra.mxu1 %v2577_v8 }
0x1ad9   :  { %2136 = vmatprep.subr.bf16.mxu1 %v2346_v0 }
0x1adc   :  { %2137 = vmatpush3.bf16.msra.mxu1 %v2584_v9 }
0x1add   :  { %2138 = vmatprep.subr.bf16.mxu1 %v2346_v0 }
0x1ae0   :  { %2139 = vmatpush3.bf16.msra.mxu1 %v2591_v10 }
0x1ae1   :  { %2140 = vmatprep.subr.bf16.mxu1 %v2346_v0 }
0x1ae4   :  { %2141 = vmatpush3.bf16.msra.mxu1 %v2598_v11 }
0x1ae5   :  { %2142 = vmatprep.subr.bf16.mxu1 %v2346_v0 }
0x1ae8   :  { %2143 = vmatpush3.bf16.msra.mxu1 %v2605_v12 }
0x1ae9   :  { %2144 = vmatprep.subr.bf16.mxu1 %v2346_v0 }
0x1aec   :  { %2145 = vmatpush3.bf16.msra.mxu1 %v2612_v13 }
0x1aed   :  { %2146 = vmatprep.subr.bf16.mxu1 %v2346_v0 }
0x1af0   :  { %2147 = vmatpush3.bf16.msra.mxu1 %v2622_v19 }
0x1af1   :  { %2180 = vmatprep.subr.bf16.mxu1 %v2346_v0 }
0x1b9e   :  { %v1235_v55 = vpop.f32.mrb[28].mxu1 }
0x1b9f   :  { %v2110_v56 = vpop.f32.mrb[29].mxu1  ;;  %v1247_v7 = vsel %vm327_vm3, %v1235_v55, -inf  ;;  %v1241_v8 = vsel %vm320_vm4, %v1235_v55, -inf }
0x1ba0   :  { %1248 = vmax.xlane.f32.xlu1 %v1247_v7  ;;  %1242 = vmax.xlane.f32.xlu0 %v1241_v8  ;;  %v1238_v9 = vpop.f32.mrb[30].mxu1 }
0x1ba1   :  { %v2111_v10 = vpop.f32.mrb[31].mxu1 }
0x1ba6   :  { %v1346_v11 = vpop.f32.mrb[32].mxu1 }
0x1ba7   :  { %v2124_v12 = vpop.f32.mrb[33].mxu1 }
0x1ba8   :  { %v1349_v43 = vpop.f32.mrb[34].mxu1 }
0x1ba9   :  { %v2125_v13 = vpop.f32.mrb[35].mxu1 }
0x1c2d   :  { %v1249_v37 = vpop.xlane.xlu1 %1248  ;;  %v1243_v39 = vpop.xlane.xlu0 %1242 }
0x1c2e   :  { %v1250_v41 = vsub.f32 %v1235_v55, %v1249_v37  ;;  %v1244_v19 = vsub.f32 %v1235_v55, %v1243_v39 }
0x1c30   :  { %v1251_v44 = vmul.f32 1.442695, %v1250_v41  ;;  %v1245_v26 = vmul.f32 1.442695, %v1244_v19 }
0x1c32   :  { %2285 = vpow2.f32 %v1251_v44 }
0x1c33   :  { %2287 = vpow2.f32 %v1245_v26 }
0x1c3c   :  { %v2286_v45 = vpop.eup %2285 }
0x1c3d   :  { %v2288_v27 = vpop.eup %2287  ;;  %1259 = vrot.lane.b32.xlu0 %v2286_v45, %s2350_s24 }
0x1c3e   :  { %v1253_v48 = vsel %vm320_vm4, %v2288_v27, 0.0 }
0x1c3f   :  { %1254 = vadd.xlane.f32.xlu1 %v1253_v48 }
0x1caf   :  { %v1260_v30 = vpop.permute.xlu0 %1259 }
0x1cb0   :  { %v1262_v49 = vsel %vm320_vm4, %v1260_v30, 0.0 }
0x1cb1   :  { %1263 = vadd.xlane.f32.xlu1 %v1262_v49 }
0x1ccc   :  { %v1255_v54 = vpop.xlane.xlu1 %1254 }
0x1ccd   :  { %2289 = vrcp.f32 %v1255_v54 }
0x1cd7   :  { %v2290_v1 = vpop.eup %2289 }
0x1cd8   :  { %v1257_v59 = vmul.f32 %v2290_v1, %v2288_v27 }
0x1d3e   :  { %v1264_v52 = vpop.xlane.xlu1 %1263 }
0x1d3f   :  { %2291 = vrcp.f32 %v1264_v52 }
0x1d49   :  { %v2292_v53 = vpop.eup %2291 }
0x1d4a   :  { %v1266_v6 = vmul.f32 %v2292_v53, %v2286_v45  ;;  %v2339_v45 = vld [vmem:[%s2952_s2] sm:$0x1] }
0x1d4c   :  { %v1267_v3 = vsel %vm348_vm5, %v1257_v59, %v1266_v6 }
0x1d4d   :  { %v1268_v50 = vpack.c.bf16 %v1267_v3, %v1267_v3 }
0x1d4f   :  { %2115 = vmatmul.mubr.msk.bf16.vlgmr.msra.gmra.mrb[36].mxu0 %vm357_vm6, %v1268_v50 }
0x1d50   :  { %2127 = vmatpush3.bf16.msra.mxu0 %v2534_v40  ;;  %2128 = vmatprep.mubr.msk.bf16.mxu0 %vm2347_vm0, %v2346_v0  ;;  %v2334_v40 = vld [vmem:[%s2950_s0 + $0x8] sm:$0xff]  }
0x1d51   :  { %2152 = vmatprep.subr.bf16.mxu0 %v2346_v0 }
0x1d57   :  { %2129 = vmatmul.mubr.msk.bf16.vlgmr.msra.gmra.mrb[40].mxu0 %vm357_vm6, %v1268_v50 }
0x1d58   :  { %2153 = vmatpush3.bf16.msra.mxu0 %v2333_v14  ;;  %2156 = vmatprep.mubr.msk.bf16.mxu0 %vm2347_vm0, %v2346_v0 }
0x1d59   :  { %2154 = vmatprep.subr.bf16.mxu0 %v2346_v0 }
0x1d5c   :  { %2155 = vmatpush3.bf16.msra.mxu0 %v2334_v40 }
0x1d5d   :  { %2160 = vmatprep.subr.bf16.mxu0 %v2346_v0 }
0x1e22   :  { %v1306_v4 = vpop.f32.mrb[36].mxu0 }
0x1e23   :  { %v1347_v16 = vadd.f32 %v1346_v11, %v1306_v4  ;;  %v2116_v24 = vpop.f32.mrb[37].mxu0  ;;  %v2335_v11 = vld [vmem:[%s2950_s0 + $0x10] sm:$0xff]  }
0x1e24   :  { %v1309_v46 = vpop.f32.mrb[38].mxu0 }
0x1e25   :  { %v2839_v17 = vadd.f32 %v1347_v16, %v2551_v42  ;;  %v2117_v18 = vpop.f32.mrb[39].mxu0 }
0x1e27   :  { %v1353_v20 = vsel %vm454_vm7, %v2839_v17, -inf }
0x1e28   :  { %1354 = vmax.xlane.f32.xlu1 %v1353_v20  ;;  %v2342_v20 = vld [vmem:[%s2952_s2 + $0x1] sm:$0x1] }
0x1e2a   :  { %v1420_v61 = vpop.f32.mrb[40].mxu0 }
0x1e2b   :  { %v2130_v57 = vpop.f32.mrb[41].mxu0 }
0x1e2c   :  { %v1423_v21 = vpop.f32.mrb[42].mxu0 }
0x1e2d   :  { %v2131_v22 = vpop.f32.mrb[43].mxu0 }
0x1eb5   :  { %v2843_v23 = vpop.xlane.xlu1 %1354 }
0x1eb6   :  { %vm1365_vm8 = vcmp.eq.f32.partialorder %v2839_v17, %v2843_v23 }
0x1eb7   :  { %v1366_v28 = vsel %vm1365_vm8, %v2560_v60, 128 }
0x1eb8   :  { %v1367_v58 = vsel %vm454_vm7, %v1366_v28, 2147483647 }
0x1eb9   :  { %v1369_v42 = vshra.s32 %v1367_v58, 16  ;;  %v1368_v38 = vand.u32 65535, %v1367_v58 }
0x1ebb   :  { %v1371_v31 = vcvt.s32.f32 %v1369_v42  ;;  %v1370_v15 = vcvt.s32.f32 %v1368_v38 }
0x1ebd   :  { %1372 = vmin.xlane.f32.xlu1 %v1371_v31 }
0x1f4a   :  { %v1373_v25 = vpop.xlane.xlu1 %1372 }
0x1f4b   :  { %vm1374_vm9 = vcmp.eq.f32.partialorder %v1371_v31, %v1373_v25  ;;  %v1379_v55 = vcvt.f32.s32 %v1373_v25 }
0x1f4c   :  { %v1375_v35 = vsel %vm1374_vm9, %v1370_v15, inf }
0x1f4d   :  { %1376 = vmin.xlane.f32.xlu1 %v1375_v35  ;;  %v1380_v7 = vshll.u32 %v1379_v55, 16 }
0x1f5e   :  { %1468 = vrot.lane.b32.xlu1 %v1466_v36, %s2349_s14 }
0x1fda   :  { %v1377_v56 = vpop.xlane.xlu1 %1376 }
0x1fdb   :  { %v1378_v8 = vcvt.f32.s32 %v1377_v56 }
0x1fdd   :  { %v1381_v9 = vadd.s32 %v1380_v7, %v1378_v8 }
0x1fde   :  { %v1469_v10 = vpop.permute.xlu1 %1468 }
0x1fdf   :  { %vm1382_vm10 = vcmp.eq.s32.totalorder %v2560_v60, %v1381_v9  ;;  %2157 = vmatmul.mubr.msk.bf16.vlgmr.msra.gmra.mrb[44].mxu0 %vm81_vm1, %v1469_v10  ;;  %v2336_v60 = vld [vmem:[%s2950_s0 + $0x18] sm:$0xff]  }
0x1fe0   :  { %vm1842_vm11 = vmpackc.low %vm1382_vm10, %vm1382_vm10  ;;  %2161 = vmatpush3.bf16.msra.mxu0 %v2335_v11  ;;  %2168 = vmatprep.mubr.msk.bf16.mxu0 %vm2347_vm0, %v2346_v0  ;;  %v2343_v11 = vld [vmem:[%s2950_s0 + $0x70] sm:$0xff]  }
0x1fe1   :  { %2149 = vmatmul.mubr.msk.bf16.vlgmr.msra.gmra.mrb[36].mxu1 %vm1842_vm11, %v2351_v33  ;;  %2162 = vmatprep.subr.bf16.mxu0 %v2346_v0 }
0x1fe2   :  { %2181 = vmatpush3.bf16.msra.mxu1 %v2526_v29  ;;  %2182 = vmatprep.mubr.msk.bf16.mxu1 %vm2347_vm0, %v2346_v0  ;;  %v2338_v29 = vld [vmem:[%s2950_s0 + $0x28] sm:$0xff]  }
0x1fe4   :  { %2163 = vmatpush3.bf16.msra.mxu0 %v2336_v60 }
0x1fe5   :  { %2164 = vmatprep.subr.bf16.mxu0 %v2346_v0 }
0x1fe8   :  { %2165 = vmatpush3.bf16.msra.mxu0 %v2337_v2 }
0x1fe9   :  { %2166 = vmatprep.subr.bf16.mxu0 %v2346_v0 }
0x1fec   :  { %2167 = vmatpush3.bf16.msra.mxu0 %v2338_v29 }
0x1fed   :  { %2172 = vmatprep.subr.bf16.mxu0 %v2346_v0 }
0x20b2   :  { %v1507_v33 = vpop.f32.mrb[44].mxu0 }
0x20b3   :  { %v2158_v12 = vpop.f32.mrb[45].mxu0 }
0x20b4   :  { %v1460_v43 = vpop.f32.mrb[36].mxu1  ;;  %v1510_v13 = vpop.f32.mrb[46].mxu0 }
0x20b5   :  { %v1461_v37 = vadd.f32 %v1460_v43, %v1420_v61  ;;  %v2150_v39 = vpop.f32.mrb[37].mxu1  ;;  %v2159_v41 = vpop.f32.mrb[47].mxu0 }
0x20b6   :  { %v1463_v19 = vpop.f32.mrb[38].mxu1 }
0x20b7   :  { %v1513_v44 = vadd.f32 %v1507_v33, %v1461_v37  ;;  %v2151_v26 = vpop.f32.mrb[39].mxu1 }
0x20b9   :  { %v1514_v27 = vadd.f32 %v2339_v45, %v1513_v44 }
0x20bb   :  { %2293 = vtanh.f32 %v1514_v27  ;;  %v1845_v30 = vmul.f32 -1.442695, %v1514_v27 }
0x20bd   :  { %2295 = vpow2.f32 %v1845_v30 }
0x20c5   :  { %v2294_v48 = vpop.eup %2293 }
0x20c6   :  { %1524 = vrot.lane.b32.xlu0 %v2294_v48, %s2348_s25 }
0x20c7   :  { %v2296_v49 = vpop.eup %2295 }
0x20c8   :  { %v1518_v54 = vadd.f32 1.0, %v2296_v49 }
0x20ca   :  { %2297 = vrcp.f32 %v1518_v54 }
0x20d4   :  { %v2298_v52 = vpop.eup %2297 }
0x20d5   :  { %v1522_v59 = vmul.f32 %v2298_v52, %v2759_v63  ;;  %v2340_v63 = vld [vmem:[%s2953_s1] sm:$0xff]  }
0x2138   :  { %v1525_v1 = vpop.permute.xlu0 %1524 }
0x2139   :  { %v1527_v53 = vmul.f32 %v2298_v52, %v1525_v1 }
0x213b   :  { %1529 = vrot.lane.b32.xlu0 %v1527_v53, %s2348_s25 }
0x21ad   :  { %v1530_v6 = vpop.permute.xlu0 %1529 }
0x21ae   :  { %v1532_v3 = vadd.f32 %v1530_v6, %v1522_v59 }
0x21b0   :  { %2299 = vtanh.f32 %v1532_v3 }
0x21ba   :  { %v2300_v50 = vpop.eup %2299 }
0x21bb   :  { %1535 = vrot.lane.b32.xlu0 %v2300_v50, %s2348_s25 }
0x222d   :  { %v1536_v14 = vpop.permute.xlu0 %1535 }
0x222e   :  { %v1538_v40 = vmul.f32 %v2298_v52, %v1536_v14 }
0x2230   :  { %1540 = vrot.lane.b32.xlu0 %v1538_v40, %s2349_s14 }
0x2234   :  { %1544 = vrot.lane.b32.xlu0 %v2785_v34, %s2352_s22  ;;  %v2341_v34 = vld [vmem:[%s2953_s1 + $0x8] sm:$0xff]  }
0x22a2   :  { %v1541_v4 = vpop.permute.xlu0 %1540 }
0x22a6   :  { %v1545_v16 = vpop.permute.xlu0 %1544 }
0x22a7   :  { %v1547_v24 = vsel %vm81_vm1, %v1541_v4, %v1545_v16  ;;  %v458_v4 = vsub.f32 %v2554_v47, %v2562_v62  ;;  %v2345_v47 = vld [vmem:[%s2952_s2 + $0x2] sm:$0x1] }
0x22a8   :  { %v1548_v46 = vpack.c.bf16 %v1547_v24, %v1547_v24  ;;  %v934_v24 = vsub.f32 %v2725_v51, %v2729_v5 }
0x22a9   :  { %v459_v16 = vmul.f32 1.442695, %v458_v4 }
0x22aa   :  { %2169 = vmatmul.mubr.msk.bf16.vlgmr.msra.gmra.mrb[48].mxu0 %vm189_vm2, %v1548_v46  ;;  %v935_v46 = vmul.f32 1.442695, %v934_v24 }
0x22ab   :  { %2173 = vmatpush3.bf16.msra.mxu0 %v2340_v63  ;;  %2176 = vmatprep.mubr.msk.bf16.mxu0 %vm2347_vm0, %v2346_v0  ;;  %v1356_v63 = vsub.f32 %v2839_v17, %v2843_v23 }
0x22ac   :  { %2174 = vmatprep.subr.bf16.mxu0 %v2346_v0 }
0x22af   :  { %2175 = vmatpush3.bf16.msra.mxu0 %v2341_v34  ;;  %v1357_v34 = vmul.f32 1.442695, %v1356_v63 }
0x22b0   :  { %2186 = vmatprep.subr.bf16.mxu0 %v2346_v0 }
0x237d   :  { %v1586_v18 = vpop.f32.mrb[48].mxu0 }
0x237e   :  { %v1587_v61 = vadd.f32 %v2342_v20, %v1586_v18  ;;  %v2170_v57 = vpop.f32.mrb[49].mxu0 }
0x237f   :  { %v1589_v21 = vpop.f32.mrb[50].mxu0 }
0x2380   :  { %2301 = vtanh.f32 %v1587_v61  ;;  %v2171_v22 = vpop.f32.mrb[51].mxu0  ;;  %v1847_v58 = vmul.f32 -1.442695, %v1587_v61 }
0x2382   :  { %2303 = vpow2.f32 %v1847_v58 }
0x238a   :  { %v2302_v28 = vpop.eup %2301 }
0x238b   :  { %1601 = vrot.lane.b32.xlu1 %v2302_v28, %s2348_s25 }
0x238c   :  { %v2304_v42 = vpop.eup %2303 }
0x238d   :  { %v1595_v31 = vadd.f32 1.0, %v2304_v42 }
0x238f   :  { %2305 = vrcp.f32 %v1595_v31 }
0x2399   :  { %v2306_v38 = vpop.eup %2305 }
0x239a   :  { %v1599_v35 = vmul.f32 %v2306_v38, %v2781_v32  ;;  %v2344_v32 = vld [vmem:[%s2950_s0 + $0x78] sm:$0xff]  }
0x23fd   :  { %v1602_v25 = vpop.permute.xlu1 %1601 }
0x23fe   :  { %v1604_v15 = vmul.f32 %v2306_v38, %v1602_v25 }
0x2400   :  { %1606 = vrot.lane.b32.xlu0 %v1604_v15, %s2348_s25 }
0x2472   :  { %v1607_v36 = vpop.permute.xlu0 %1606 }
0x2473   :  { %v1609_v55 = vadd.f32 %v1607_v36, %v1599_v35 }
0x2475   :  { %2307 = vtanh.f32 %v1609_v55 }
0x247f   :  { %v2308_v56 = vpop.eup %2307 }
0x2480   :  { %1612 = vrot.lane.b32.xlu1 %v2308_v56, %s2348_s25 }
0x24f2   :  { %v1613_v7 = vpop.permute.xlu1 %1612 }
0x24f3   :  { %v1615_v8 = vmul.f32 %v2306_v38, %v1613_v7 }
0x24f5   :  { %v1616_v9 = vpack.c.bf16 %v1615_v8, %v1615_v8 }
0x24f7   :  { %1618 = vrot.lane.b32.xlu0 %v1616_v9, %s2349_s14 }
0x2569   :  { %v1619_v10 = vpop.permute.xlu0 %1618 }
0x256a   :  { %2177 = vmatmul.mubr.msk.bf16.vlgmr.msra.gmra.mrb[52].mxu0 %vm81_vm1, %v1619_v10 }
0x256b   :  { %2187 = vmatpush3.bf16.msra.mxu0 %v2343_v11  ;;  %2190 = vmatprep.mubr.msk.bf16.mxu0 %vm2347_vm0, %v2346_v0 }
0x256c   :  { %2188 = vmatprep.subr.bf16.mxu0 %v2346_v0 }
0x256f   :  { %2189 = vmatpush3.bf16.msra.mxu0 %v2344_v32 }
0x2572   :  { %2191 = vmatmul.mubr.msk.bf16.vlgmr.msra.gmra.mrb[56].mxu0 %vm81_vm1, %v1619_v10 }
0x263d   :  { %v1657_v60 = vpop.f32.mrb[52].mxu0 }
0x263e   :  { %v2178_v2 = vpop.f32.mrb[53].mxu0  ;;  %v1669_v29 = vsel %vm327_vm3, %v1657_v60, -inf  ;;  %v1663_v33 = vsel %vm320_vm4, %v1657_v60, -inf }
0x263f   :  { %1670 = vmax.xlane.f32.xlu1 %v1669_v29  ;;  %1664 = vmax.xlane.f32.xlu0 %v1663_v33  ;;  %v1660_v12 = vpop.f32.mrb[54].mxu0 }
0x2640   :  { %v2179_v43 = vpop.f32.mrb[55].mxu0 }
0x2645   :  { %v1768_v13 = vpop.f32.mrb[56].mxu0 }
0x2646   :  { %v2192_v37 = vpop.f32.mrb[57].mxu0 }
0x2647   :  { %v1771_v0 = vpop.f32.mrb[58].mxu0 }
0x2648   :  { %v2193_v39 = vpop.f32.mrb[59].mxu0 }
0x26cc   :  { %v1671_v41 = vpop.xlane.xlu1 %1670  ;;  %v1665_v19 = vpop.xlane.xlu0 %1664 }
0x26cd   :  { %v1672_v44 = vsub.f32 %v1657_v60, %v1671_v41  ;;  %v1666_v26 = vsub.f32 %v1657_v60, %v1665_v19 }
0x26cf   :  { %v1673_v45 = vmul.f32 1.442695, %v1672_v44  ;;  %v1667_v27 = vmul.f32 1.442695, %v1666_v26 }
0x26d1   :  { %2309 = vpow2.f32 %v1673_v45 }
0x26d2   :  { %2311 = vpow2.f32 %v1667_v27 }
0x26db   :  { %v2310_v48 = vpop.eup %2309 }
0x26dc   :  { %v2312_v30 = vpop.eup %2311  ;;  %1681 = vrot.lane.b32.xlu0 %v2310_v48, %s2350_s24 }
0x26dd   :  { %v1675_v49 = vsel %vm320_vm4, %v2312_v30, 0.0 }
0x26de   :  { %1676 = vadd.xlane.f32.xlu1 %v1675_v49 }
0x274e   :  { %v1682_v54 = vpop.permute.xlu0 %1681 }
0x274f   :  { %v1684_v52 = vsel %vm320_vm4, %v1682_v54, 0.0 }
0x2750   :  { %1685 = vadd.xlane.f32.xlu1 %v1684_v52 }
0x276b   :  { %v1677_v1 = vpop.xlane.xlu1 %1676 }
0x276c   :  { %2313 = vrcp.f32 %v1677_v1 }
0x2776   :  { %v2314_v59 = vpop.eup %2313 }
0x2777   :  { %v1679_v3 = vmul.f32 %v2314_v59, %v2312_v30 }
0x27dd   :  { %v1686_v53 = vpop.xlane.xlu1 %1685 }
0x27de   :  { %2315 = vrcp.f32 %v1686_v53 }
0x27df   :  { %2317 = vpow2.f32 %v459_v16 }
0x27e0   :  { %2319 = vpow2.f32 %v935_v46 }
0x27e1   :  { %2321 = vpow2.f32 %v1357_v34 }
0x27e8   :  { %v2316_v6 = vpop.eup %2315 }
0x27e9   :  { %v1688_v50 = vmul.f32 %v2316_v6, %v2310_v48  ;;  %v2318_v5 = vpop.eup %2317 }
0x27ea   :  { %v461_v22 = vsel %vm454_vm7, %v2318_v5, 0.0  ;;  %v2320_v17 = vpop.eup %2319 }
0x27eb   :  { %v1689_v14 = vsel %vm348_vm5, %v1679_v3, %v1688_v50  ;;  %v937_v23 = vsel %vm454_vm7, %v2320_v17, 0.0  ;;  %v2322_v28 = vpop.eup %2321 }
0x27ec   :  { %v1690_v40 = vpack.c.bf16 %v1689_v14, %v1689_v14  ;;  %v1359_v58 = vsel %vm454_vm7, %v2322_v28, 0.0 }
0x27ee   :  { %2183 = vmatmul.mubr.msk.bf16.vlgmr.msra.gmra.mrb[40].mxu1 %vm357_vm6, %v1690_v40 }
0x28c1   :  { %v1728_v18 = vpop.f32.mrb[40].mxu1 }
0x28c2   :  { %v1769_v20 = vadd.f32 %v1768_v13, %v1728_v18  ;;  %v2184_v61 = vpop.f32.mrb[41].mxu1 }
0x28c3   :  { %v1731_v57 = vpop.f32.mrb[42].mxu1 }
0x28c4   :  { %v2185_v21 = vpop.f32.mrb[43].mxu1  ;;  %v1774_v62 = vadd.f32 %v2345_v47, %v1769_v20 }
0x28c6   :  { %v1775_v51 = vsel %vm454_vm7, %v1774_v62, -inf }
0x28c7   :  { %1776 = vmax.xlane.f32.xlu1 %v1775_v51 }
0x28cb   :  { %462 = vadd.xlane.f32.xlu1 %v461_v22 }
0x28cf   :  { %938 = vadd.xlane.f32.xlu1 %v937_v23 }
0x28d3   :  { %1360 = vadd.xlane.f32.xlu1 %v1359_v58 }
0x2954   :  { %v1777_v42 = vpop.xlane.xlu1 %1776 }
0x2955   :  { %v1778_v31 = vsub.f32 %v1774_v62, %v1777_v42 }
0x2957   :  { %v1779_v38 = vmul.f32 1.442695, %v1778_v31 }
0x2958   :  { %v463_v25 = vpop.xlane.xlu1 %462 }
0x2959   :  { %2323 = vpow2.f32 %v1779_v38 }
0x295a   :  { %2325 = vrcp.f32 %v463_v25 }
0x295c   :  { %v939_v15 = vpop.xlane.xlu1 %938 }
0x295d   :  { %2327 = vrcp.f32 %v939_v15 }
0x2960   :  { %v1361_v35 = vpop.xlane.xlu1 %1360 }
0x2961   :  { %2329 = vrcp.f32 %v1361_v35 }
0x2963   :  { %v2324_v36 = vpop.eup %2323 }
0x2964   :  { %v2326_v55 = vpop.eup %2325  ;;  %v1781_v56 = vsel %vm454_vm7, %v2324_v36, 0.0 }
0x2965   :  { %v465_v7 = vmul.f32 %v2326_v55, %v2318_v5  ;;  %1782 = vadd.xlane.f32.xlu0 %v1781_v56 }
0x2967   :  { %v2328_v8 = vpop.eup %2327  ;;  %466 = vst [vmem:[%s2954_s4] sm:$0x1] %v465_v7 }
0x2968   :  { %v941_v9 = vmul.f32 %v2328_v8, %v2320_v17 }
0x296a   :  { %942 = vst [vmem:[%s2954_s4 + $0x1] sm:$0x1] %v941_v9 }
0x296b   :  { %v2330_v10 = vpop.eup %2329 }
0x296c   :  { %v1363_v11 = vmul.f32 %v2330_v10, %v2322_v28 }
0x296e   :  { %1364 = vst [vmem:[%s2954_s4 + $0x2] sm:$0x1] %v1363_v11 }
0x29f2   :  { %v1783_v32 = vpop.xlane.xlu0 %1782 }
0x29f3   :  { %2331 = vrcp.f32 %v1783_v32 }
0x29fd   :  { %v2332_v60 = vpop.eup %2331 }
0x29fe   :  { %v1785_v2 = vmul.f32 %v2332_v60, %v2324_v36 }
0x2a00   :  { %1786 = vst [vmem:[%s2954_s4 + $0x3] sm:$0x1] %v1785_v2 }

</bundles_post_ra>
